<compile_context>
chip_gen: v7x
topology: tpu7x:2x2x1
jax: 0.10.0
libtpu: 0.0.40
codegen_flags: <defaults>
</compile_context>

<pallas_src>
import functools

import jax
import jax.numpy as jnp
from jax.experimental import pallas as pl
from jax.experimental.pallas import tpu as pltpu

NEG_INF = -1e20
LEAKY_SLOPE = 0.01     # torch.nn.LeakyReLU default negative_slope
LN_EPS = 1e-5          # torch.nn.LayerNorm default eps


def _leaky_relu(x):
    return jnp.where(x > 0, x, LEAKY_SLOPE * x)


def _layer_norm(x, w, b):
    mean = jnp.mean(x, axis=-1, keepdims=True)
    var = jnp.mean((x - mean) ** 2, axis=-1, keepdims=True)   # biased, like torch
    return (x - mean) * jax.lax.rsqrt(var + LN_EPS) * w + b


def _softmax_last(x):
    m = jnp.max(x, axis=-1, keepdims=True)
    e = jnp.exp(x - m)
    # EUP approximate reciprocal -> the divide does not occupy VALU slots.
    return e * pl.reciprocal(jnp.sum(e, axis=-1, keepdims=True), approx=True)


def _decoder_kernel(x_ref, m_ref,
                    wq_ref, wkx_ref, wkr_ref, wvx_ref, wvr_ref,
                    ln1w_ref, ln1b_ref,
                    w1_ref, b1_ref, w2_ref, b2_ref,
                    ln2w_ref, ln2b_ref,
                    o_ref,
                    x_scr):
    """Fused TransformerDecoder forward.

    grid = (batch_blocks, num_layers).  The layer axis is sequential ("arbitrary") and the
    activation lives in the VMEM scratch `x_scr` across it; all per-layer weights are
    indexed by the layer grid axis, so the next layer's weights are prefetched while the
    current layer computes.
    """
    layer = pl.program_id(1)
    num_layers = pl.num_programs(1)

    bb, seq_len, h_in = x_scr.shape
    n_head = wq_ref.shape[1]
    n_rows = bb * seq_len

    # Load the fresh activation only at the first layer of this batch block.
    @pl.when(layer == 0)
    def _():
        x_scr[...] = x_ref[...]

    x3 = x_scr[...]                      # (bb, L, H)  resident activation
    m3 = m_ref[...]                      # (bb, L, 1)  1.0 = valid token, 0.0 = pad

    # Flat (rows, H) view: dense matmuls / LayerNorm / FFN run on one 2-D tile.
    x2 = x3.reshape(n_rows, h_in)
    m2 = m3.reshape(n_rows, 1)

    residual = x2

    # ---- MultiHeadAttn_Root_Enhence (after_norm=True => no pre-norm) ----
    # root[b, l, :] = x[b, 0, :] at valid rows, 0 at pad rows.
    root3 = m3 * x3[:, 0:1, :]                       # (bb, L, H)
    root2 = root3.reshape(n_rows, h_in)
    # kv = [x, root] @ Wkv  ==  x @ Wkv[:H] + root @ Wkv[H:]   (concat removed; weights
    # are pre-split per head in the wrapper, so no unaligned lane slices below).

    head_outs = []
    for h in range(n_head):
        qh2 = jnp.dot(x2, wq_ref[0, h], preferred_element_type=jnp.float32)       # (N, d)
        kh2 = (jnp.dot(x2, wkx_ref[0, h], preferred_element_type=jnp.float32)
               + jnp.dot(root2, wkr_ref[0, h], preferred_element_type=jnp.float32))
        vh2 = (jnp.dot(x2, wvx_ref[0, h], preferred_element_type=jnp.float32)
               + jnp.dot(root2, wvr_ref[0, h], preferred_element_type=jnp.float32))
        d = qh2.shape[-1]
        qh = qh2.reshape(bb, seq_len, d)
        kh = kh2.reshape(bb, seq_len, d)
        vh = vh2.reshape(bb, seq_len, d)

        # scores (scale = 1 since attn_scale=False), batched over the batch dim
        s = jnp.einsum('bqd,bkd->bqk', qh, kh,
                       preferred_element_type=jnp.float32)                          # (bb, L, L)
        # valid query rows: masked_fill(score == 0, -1e20) then softmax over keys;
        # pad query rows keep the raw scores, exactly as in the PyTorch code.
        masked = jnp.where(s == 0.0, NEG_INF, s)
        attn = jnp.where(m3 > 0, _softmax_last(masked), s)
        # attention dropout -> identity (inference)
        oh = jnp.einsum('bqk,bkd->bqd', attn, vh,
                        preferred_element_type=jnp.float32)                          # (bb, L, d)
        head_outs.append(oh.reshape(n_rows, d))

    attn_out = _leaky_relu(jnp.concatenate(head_outs, axis=-1))                      # (N, H)

    x2 = attn_out + residual
    x2 = _layer_norm(x2, ln1w_ref[0], ln1b_ref[0])        # after_norm -> norm1 here

    # ---- FFN ----
    residual = x2
    h1 = _leaky_relu(jnp.dot(x2, w1_ref[0], preferred_element_type=jnp.float32)
                     + b1_ref[0])
    ff = jnp.dot(h1, w2_ref[0], preferred_element_type=jnp.float32) + b2_ref[0]
    x2 = _layer_norm(ff + residual, ln2w_ref[0], ln2b_ref[0])                        # norm2

    # x = x - detach(x at pad positions)  ==>  zero the pad rows
    x2 = m2 * x2

    new_x = x2.reshape(bb, seq_len, h_in)
    x_scr[...] = new_x

    @pl.when(layer == num_layers - 1)
    def _():
        o_ref[...] = new_x


def _split_heads(w, n_head):
    """(h_in, h_out) -> (n_head, h_in, d): split the output columns per head."""
    h_in_dim, h_out = w.shape
    d = h_out // n_head
    return jnp.transpose(w.reshape(h_in_dim, n_head, d), (1, 0, 2))


def transformer_decoder(x, mask, layer_params, n_head, *, batch_block=None,
                        vmem_limit_bytes=32 * 1024 * 1024):
    """Fused TransformerDecoder forward pass (all layers in one pallas_call).

    x:    (B, L, H) float32 activations (pad rows expected to be zero, as in usage).
    mask: (B, L), 1 = valid token, 0 = pad (dense form of `mask_nonzero`).
    layer_params: list (len = num_layers) of dicts with
        wq (H,H), wkv (2H,2H), ln1w/ln1b (1,H), w1 (H,Hh), b1 (1,Hh),
        w2 (Hh,H), b2 (1,H), ln2w/ln2b (1,H); linear weights stored (in, out): y = x @ W.
    """
    B, L, H = x.shape
    num_layers = len(layer_params)
    Hh = layer_params[0]["w1"].shape[1]
    assert H % n_head == 0
    d = H // n_head
    bb = B if batch_block is None else batch_block
    assert B % bb == 0

    mask_f = mask.astype(jnp.float32).reshape(B, L, 1)

    # ---- stack per-layer weights, pre-split Q/K/V per head and split Wkv (wrapper-side XLA) ----
    def stack(fn):
        return jnp.stack([fn(p) for p in layer_params], axis=0)

    wq  = stack(lambda p: _split_heads(p["wq"], n_head))             # (NL, nh, H, d)
    wkx = stack(lambda p: _split_heads(p["wkv"][:H, :H], n_head))    # k from x
    wkr = stack(lambda p: _split_heads(p["wkv"][H:, :H], n_head))    # k from root
    wvx = stack(lambda p: _split_heads(p["wkv"][:H, H:], n_head))    # v from x
    wvr = stack(lambda p: _split_heads(p["wkv"][H:, H:], n_head))    # v from root
    ln1w = stack(lambda p: p["ln1w"].reshape(1, H))
    ln1b = stack(lambda p: p["ln1b"].reshape(1, H))
    w1 = stack(lambda p: p["w1"])
    b1 = stack(lambda p: p["b1"].reshape(1, Hh))
    w2 = stack(lambda p: p["w2"])
    b2 = stack(lambda p: p["b2"].reshape(1, H))
    ln2w = stack(lambda p: p["ln2w"].reshape(1, H))
    ln2b = stack(lambda p: p["ln2b"].reshape(1, H))

    def batch_spec(shape):
        return pl.BlockSpec(shape, lambda b, l: (b, 0, 0))

    def layer_spec(shape):
        zeros = (0,) * len(shape)
        return pl.BlockSpec((1,) + shape, lambda b, l: (l,) + zeros)

    grid_spec = pltpu.PrefetchScalarGridSpec(
        num_scalar_prefetch=0,
        grid=(B // bb, num_layers),        # (parallel batch blocks, sequential layers)
        in_specs=[
            batch_spec((bb, L, H)),        # x      (fetched once per batch block)
            batch_spec((bb, L, 1)),        # mask
            layer_spec((n_head, H, d)),    # Wq per head
            layer_spec((n_head, H, d)),    # Wk (x part) per head
            layer_spec((n_head, H, d)),    # Wk (root part) per head
            layer_spec((n_head, H, d)),    # Wv (x part) per head
            layer_spec((n_head, H, d)),    # Wv (root part) per head
            layer_spec((1, H)),            # ln1 weight
            layer_spec((1, H)),            # ln1 bias
            layer_spec((H, Hh)),           # ffn W1
            layer_spec((1, Hh)),           # ffn b1
            layer_spec((Hh, H)),           # ffn W2
            layer_spec((1, H)),            # ffn b2
            layer_spec((1, H)),            # ln2 weight
            layer_spec((1, H)),            # ln2 bias
        ],
        out_specs=pl.BlockSpec((bb, L, H), lambda b, l: (b, 0, 0)),
        scratch_shapes=[pltpu.VMEM((bb, L, H), jnp.float32)],   # activation carried across layers
    )

    return pl.pallas_call(
        _decoder_kernel,
        out_shape=jax.ShapeDtypeStruct((B, L, H), jnp.float32),
        grid_spec=grid_spec,
        compiler_params=pltpu.CompilerParams(
            dimension_semantics=("parallel", "arbitrary"),
            vmem_limit_bytes=vmem_limit_bytes,
        ),
    )(x, mask_f, wq, wkx, wkr, wvx, wvr,
      ln1w, ln1b, w1, b1, w2, b2, ln2w, ln2b)


def init_params(key, num_layers, h_in, h_hid):
    """Deterministic synthetic parameters.  Linear weights stored (in, out): y = x @ W."""
    layers = []
    for _ in range(num_layers):
        key, k0, k1, k2, k3, k4, k5 = jax.random.split(key, 7)
        layers.append({
            "wq":   0.1 * jax.random.normal(k0, (h_in, h_in), jnp.float32),
            "wkv":  0.1 * jax.random.normal(k1, (2 * h_in, 2 * h_in), jnp.float32),
            "ln1w": jnp.ones((1, h_in), jnp.float32),
            "ln1b": jnp.zeros((1, h_in), jnp.float32),
            "w1":   0.1 * jax.random.normal(k2, (h_in, h_hid), jnp.float32),
            "b1":   0.1 * jax.random.normal(k3, (1, h_hid), jnp.float32),
            "w2":   0.1 * jax.random.normal(k4, (h_hid, h_in), jnp.float32),
            "b2":   0.1 * jax.random.normal(k5, (1, h_in), jnp.float32),
            "ln2w": jnp.ones((1, h_in), jnp.float32),
            "ln2b": jnp.zeros((1, h_in), jnp.float32),
        })
    return layers


if __name__ == "__main__":
    B, L, H = 2, 8, 32
    N_HEAD, H_HID, NUM_LAYERS = 4, 64, 2

    key = jax.random.PRNGKey(0)
    key, kx = jax.random.split(key)

    # dense mask: batch 0 fully valid, batch 1 has 5 valid tokens then pad
    mask = jnp.array([[1, 1, 1, 1, 1, 1, 1, 1],
                      [1, 1, 1, 1, 1, 0, 0, 0]], dtype=jnp.float32)

    # pad rows zeroed, as in real usage (the == 0 attention mask relies on it)
    x = jax.random.normal(kx, (B, L, H), jnp.float32) * mask[:, :, None]

    params = init_params(key, NUM_LAYERS, H, H_HID)

    out = transformer_decoder(x, mask, params, N_HEAD)
    out = jax.block_until_ready(out)

    assert out.shape == (B, L, H)
    assert bool(jnp.all(jnp.isfinite(out)))
    assert bool(jnp.all(out[1, 5:] == 0.0))   # pad rows zeroed by the final mask step
    print("KERNEL_OK")
</pallas_src>

<mosaic_0001>
module attributes {stable_mosaic.version = 11 : i64} {
  func.func @_decoder_kernel(%arg0: i32, %arg1: i32, %arg2: memref<2x8x32xf32, #tpu.memory_space<vmem>>, %arg3: memref<2x8x1xf32, #tpu.memory_space<vmem>>, %arg4: memref<1x4x32x8xf32, #tpu.memory_space<vmem>>, %arg5: memref<1x4x32x8xf32, #tpu.memory_space<vmem>>, %arg6: memref<1x4x32x8xf32, #tpu.memory_space<vmem>>, %arg7: memref<1x4x32x8xf32, #tpu.memory_space<vmem>>, %arg8: memref<1x4x32x8xf32, #tpu.memory_space<vmem>>, %arg9: memref<1x1x32xf32, #tpu.memory_space<vmem>>, %arg10: memref<1x1x32xf32, #tpu.memory_space<vmem>>, %arg11: memref<1x32x64xf32, #tpu.memory_space<vmem>>, %arg12: memref<1x1x64xf32, #tpu.memory_space<vmem>>, %arg13: memref<1x64x32xf32, #tpu.memory_space<vmem>>, %arg14: memref<1x1x32xf32, #tpu.memory_space<vmem>>, %arg15: memref<1x1x32xf32, #tpu.memory_space<vmem>>, %arg16: memref<1x1x32xf32, #tpu.memory_space<vmem>>, %arg17: memref<2x8x32xf32, #tpu.memory_space<vmem>>, %arg18: memref<2x8x32xf32, #tpu.memory_space<vmem>>) attributes {dimension_semantics = [#tpu.dimension_semantics<parallel>, #tpu.dimension_semantics<arbitrary>], iteration_bounds = array<i64: 1, 2>, scalar_prefetch = 0 : i64, scratch_operands = 1 : i64, tpu.core_type = #tpu.core_type<tc>, window_params = [{transform_indices = @transform_0, window_bounds = array<i64: 2, 8, 32>}, {transform_indices = @transform_1, window_bounds = array<i64: 2, 8, 1>}, {transform_indices = @transform_2, window_bounds = array<i64: 1, 4, 32, 8>}, {transform_indices = @transform_3, window_bounds = array<i64: 1, 4, 32, 8>}, {transform_indices = @transform_4, window_bounds = array<i64: 1, 4, 32, 8>}, {transform_indices = @transform_5, window_bounds = array<i64: 1, 4, 32, 8>}, {transform_indices = @transform_6, window_bounds = array<i64: 1, 4, 32, 8>}, {transform_indices = @transform_7, window_bounds = array<i64: 1, 1, 32>}, {transform_indices = @transform_8, window_bounds = array<i64: 1, 1, 32>}, {transform_indices = @transform_9, window_bounds = array<i64: 1, 32, 64>}, {transform_indices = @transform_10, window_bounds = array<i64: 1, 1, 64>}, {transform_indices = @transform_11, window_bounds = array<i64: 1, 64, 32>}, {transform_indices = @transform_12, window_bounds = array<i64: 1, 1, 32>}, {transform_indices = @transform_13, window_bounds = array<i64: 1, 1, 32>}, {transform_indices = @transform_14, window_bounds = array<i64: 1, 1, 32>}, {transform_indices = @transform_15, window_bounds = array<i64: 2, 8, 32>}]} {
    %c0_i32 = arith.constant 0 : i32
    %0 = arith.cmpi eq, %arg1, %c0_i32 : i32
    %1 = arith.extui %0 : i1 to i32
    %c0_i32_0 = arith.constant 0 : i32
    %2 = arith.cmpi ne, %1, %c0_i32_0 : i32
    scf.if %2 {
      %c0_174 = arith.constant 0 : index
      %c0_175 = arith.constant 0 : index
      %c0_176 = arith.constant 0 : index
      %266 = vector.load %arg2[%c0_174, %c0_175, %c0_176] : memref<2x8x32xf32, #tpu.memory_space<vmem>>, vector<2x8x32xf32>
      %c0_177 = arith.constant 0 : index
      %c0_178 = arith.constant 0 : index
      %c0_179 = arith.constant 0 : index
      %267 = vector.load %arg18[%c0_177, %c0_178, %c0_179] : memref<2x8x32xf32, #tpu.memory_space<vmem>>, vector<2x8x32xf32>
      tpu.vector_store %arg18[%c0_177, %c0_178, %c0_179], %266 {strides = array<i32>} : memref<2x8x32xf32, #tpu.memory_space<vmem>>, vector<2x8x32xf32>,
    } else {
    }
    %c0 = arith.constant 0 : index
    %c0_1 = arith.constant 0 : index
    %c0_2 = arith.constant 0 : index
    %3 = vector.load %arg18[%c0, %c0_1, %c0_2] : memref<2x8x32xf32, #tpu.memory_space<vmem>>, vector<2x8x32xf32>
    %c0_3 = arith.constant 0 : index
    %c0_4 = arith.constant 0 : index
    %c0_5 = arith.constant 0 : index
    %4 = vector.load %arg3[%c0_3, %c0_4, %c0_5] : memref<2x8x1xf32, #tpu.memory_space<vmem>>, vector<2x8x1xf32>
    %5 = vector.shape_cast %3 : vector<2x8x32xf32> to vector<16x32xf32>
    %6 = vector.shape_cast %4 : vector<2x8x1xf32> to vector<16x1xf32>
    %7 = vector.extract_strided_slice %3 {offsets = [0, 0, 0], sizes = [2, 1, 32], strides = [1, 1, 1]} : vector<2x8x32xf32> to vector<2x1x32xf32>
    %8 = vector.broadcast %4 : vector<2x8x1xf32> to vector<2x8x32xf32>
    %9 = vector.broadcast %7 : vector<2x1x32xf32> to vector<2x8x32xf32>
    %10 = arith.mulf %8, %9 : vector<2x8x32xf32>
    %11 = vector.shape_cast %10 : vector<2x8x32xf32> to vector<16x32xf32>
    %c0_6 = arith.constant 0 : index
    %c0_7 = arith.constant 0 : index
    %c0_8 = arith.constant 0 : index
    %c0_9 = arith.constant 0 : index
    %12 = vector.load %arg4[%c0_6, %c0_7, %c0_8, %c0_9] : memref<1x4x32x8xf32, #tpu.memory_space<vmem>>, vector<1x1x32x8xf32>
    %13 = vector.shape_cast %12 : vector<1x1x32x8xf32> to vector<32x8xf32>
    %cst = arith.constant dense<0.000000e+00> : vector<16x8xf32>
    %14 = tpu.matmul %5, %13, %cst {dimension_numbers = #tpu.dot_dimension_numbers<[1], [0], [0], [1], [0, 0, 1, 1], [], []>} : vector<16x32xf32>, vector<32x8xf32>, vector<16x8xf32> -> vector<16x8xf32>
    %c0_10 = arith.constant 0 : index
    %c0_11 = arith.constant 0 : index
    %c0_12 = arith.constant 0 : index
    %c0_13 = arith.constant 0 : index
    %15 = vector.load %arg5[%c0_10, %c0_11, %c0_12, %c0_13] : memref<1x4x32x8xf32, #tpu.memory_space<vmem>>, vector<1x1x32x8xf32>
    %16 = vector.shape_cast %15 : vector<1x1x32x8xf32> to vector<32x8xf32>
    %cst_14 = arith.constant dense<0.000000e+00> : vector<16x8xf32>
    %17 = tpu.matmul %5, %16, %cst_14 {dimension_numbers = #tpu.dot_dimension_numbers<[1], [0], [0], [1], [0, 0, 1, 1], [], []>} : vector<16x32xf32>, vector<32x8xf32>, vector<16x8xf32> -> vector<16x8xf32>
    %c0_15 = arith.constant 0 : index
    %c0_16 = arith.constant 0 : index
    %c0_17 = arith.constant 0 : index
    %c0_18 = arith.constant 0 : index
    %18 = vector.load %arg6[%c0_15, %c0_16, %c0_17, %c0_18] : memref<1x4x32x8xf32, #tpu.memory_space<vmem>>, vector<1x1x32x8xf32>
    %19 = vector.shape_cast %18 : vector<1x1x32x8xf32> to vector<32x8xf32>
    %cst_19 = arith.constant dense<0.000000e+00> : vector<16x8xf32>
    %20 = tpu.matmul %11, %19, %cst_19 {dimension_numbers = #tpu.dot_dimension_numbers<[1], [0], [0], [1], [0, 0, 1, 1], [], []>} : vector<16x32xf32>, vector<32x8xf32>, vector<16x8xf32> -> vector<16x8xf32>
    %21 = arith.addf %17, %20 : vector<16x8xf32>
    %c0_20 = arith.constant 0 : index
    %c0_21 = arith.constant 0 : index
    %c0_22 = arith.constant 0 : index
    %c0_23 = arith.constant 0 : index
    %22 = vector.load %arg7[%c0_20, %c0_21, %c0_22, %c0_23] : memref<1x4x32x8xf32, #tpu.memory_space<vmem>>, vector<1x1x32x8xf32>
    %23 = vector.shape_cast %22 : vector<1x1x32x8xf32> to vector<32x8xf32>
    %cst_24 = arith.constant dense<0.000000e+00> : vector<16x8xf32>
    %24 = tpu.matmul %5, %23, %cst_24 {dimension_numbers = #tpu.dot_dimension_numbers<[1], [0], [0], [1], [0, 0, 1, 1], [], []>} : vector<16x32xf32>, vector<32x8xf32>, vector<16x8xf32> -> vector<16x8xf32>
    %c0_25 = arith.constant 0 : index
    %c0_26 = arith.constant 0 : index
    %c0_27 = arith.constant 0 : index
    %c0_28 = arith.constant 0 : index
    %25 = vector.load %arg8[%c0_25, %c0_26, %c0_27, %c0_28] : memref<1x4x32x8xf32, #tpu.memory_space<vmem>>, vector<1x1x32x8xf32>
    %26 = vector.shape_cast %25 : vector<1x1x32x8xf32> to vector<32x8xf32>
    %cst_29 = arith.constant dense<0.000000e+00> : vector<16x8xf32>
    %27 = tpu.matmul %11, %26, %cst_29 {dimension_numbers = #tpu.dot_dimension_numbers<[1], [0], [0], [1], [0, 0, 1, 1], [], []>} : vector<16x32xf32>, vector<32x8xf32>, vector<16x8xf32> -> vector<16x8xf32>
    %28 = arith.addf %24, %27 : vector<16x8xf32>
    %29 = vector.shape_cast %14 : vector<16x8xf32> to vector<2x8x8xf32>
    %30 = vector.shape_cast %21 : vector<16x8xf32> to vector<2x8x8xf32>
    %31 = vector.shape_cast %28 : vector<16x8xf32> to vector<2x8x8xf32>
    "tpu.trace_start"() <{level = 10 : i32, message = "bqd,bkd->bqk"}> : () -> ()
    %cst_30 = arith.constant dense<0.000000e+00> : vector<2x8x8xf32>
    %32 = tpu.matmul %29, %30, %cst_30 {dimension_numbers = #tpu.dot_dimension_numbers<[2], [2], [1], [1], [0, 0, 0, 1, 1, 1], [0], [0]>} : vector<2x8x8xf32>, vector<2x8x8xf32>, vector<2x8x8xf32> -> vector<2x8x8xf32>
    %cst_31 = arith.constant 0.000000e+00 : f32
    "tpu.trace_stop"() : () -> ()
    %33 = vector.broadcast %cst_31 : f32 to vector<2x8x8xf32>
    %34 = arith.cmpf oeq, %32, %33 : vector<2x8x8xf32>
    %cst_32 = arith.constant -1.000000e+20 : f32
    %35 = vector.broadcast %cst_32 : f32 to vector<2x8x8xf32>
    %36 = arith.select %34, %35, %32 : vector<2x8x8xi1>, vector<2x8x8xf32>
    %cst_33 = arith.constant 0.000000e+00 : f32
    %37 = vector.broadcast %cst_33 : f32 to vector<2x8x1xf32>
    %38 = arith.cmpf ogt, %4, %37 : vector<2x8x1xf32>
    %cst_34 = arith.constant dense<0xFF800000> : vector<2x8xf32>
    %39 = vector.multi_reduction <maximumf>, %36, %cst_34 [2] : vector<2x8x8xf32> to vector<2x8xf32>
    %40 = vector.shape_cast %39 : vector<2x8xf32> to vector<2x8x1xf32>
    %41 = vector.broadcast %40 : vector<2x8x1xf32> to vector<2x8x8xf32>
    %42 = arith.subf %36, %41 : vector<2x8x8xf32>
    %43 = math.exp %42 : vector<2x8x8xf32>
    %cst_35 = arith.constant dense<0.000000e+00> : vector<2x8xf32>
    %44 = vector.multi_reduction <add>, %43, %cst_35 [2] : vector<2x8x8xf32> to vector<2x8xf32>
    %45 = vector.shape_cast %44 : vector<2x8xf32> to vector<2x8x1xf32>
    %46 = tpu.reciprocal %45 {approx = true} : vector<2x8x1xf32> -> vector<2x8x1xf32>
    %47 = vector.broadcast %46 : vector<2x8x1xf32> to vector<2x8x8xf32>
    %48 = arith.mulf %43, %47 : vector<2x8x8xf32>
    %49 = vector.shape_cast %38 : vector<2x8x1xi1> to vector<2x8x1xi1>
    %50 = vector.broadcast %49 : vector<2x8x1xi1> to vector<2x8x8xi1>
    %51 = arith.select %50, %48, %32 : vector<2x8x8xi1>, vector<2x8x8xf32>
    "tpu.trace_start"() <{level = 10 : i32, message = "bqk,bkd->bqd"}> : () -> ()
    %cst_36 = arith.constant dense<0.000000e+00> : vector<2x8x8xf32>
    %52 = tpu.matmul %51, %31, %cst_36 {dimension_numbers = #tpu.dot_dimension_numbers<[2], [1], [1], [2], [0, 0, 0, 1, 1, 2], [0], [0]>} : vector<2x8x8xf32>, vector<2x8x8xf32>, vector<2x8x8xf32> -> vector<2x8x8xf32>
    "tpu.trace_stop"() : () -> ()
    %53 = vector.shape_cast %52 : vector<2x8x8xf32> to vector<16x8xf32>
    %c0_37 = arith.constant 0 : index
    %c1 = arith.constant 1 : index
    %c0_38 = arith.constant 0 : index
    %c0_39 = arith.constant 0 : index
    %54 = vector.load %arg4[%c0_37, %c1, %c0_38, %c0_39] : memref<1x4x32x8xf32, #tpu.memory_space<vmem>>, vector<1x1x32x8xf32>
    %55 = vector.shape_cast %54 : vector<1x1x32x8xf32> to vector<32x8xf32>
    %cst_40 = arith.constant dense<0.000000e+00> : vector<16x8xf32>
    %56 = tpu.matmul %5, %55, %cst_40 {dimension_numbers = #tpu.dot_dimension_numbers<[1], [0], [0], [1], [0, 0, 1, 1], [], []>} : vector<16x32xf32>, vector<32x8xf32>, vector<16x8xf32> -> vector<16x8xf32>
    %c0_41 = arith.constant 0 : index
    %c1_42 = arith.constant 1 : index
    %c0_43 = arith.constant 0 : index
    %c0_44 = arith.constant 0 : index
    %57 = vector.load %arg5[%c0_41, %c1_42, %c0_43, %c0_44] : memref<1x4x32x8xf32, #tpu.memory_space<vmem>>, vector<1x1x32x8xf32>
    %58 = vector.shape_cast %57 : vector<1x1x32x8xf32> to vector<32x8xf32>
    %cst_45 = arith.constant dense<0.000000e+00> : vector<16x8xf32>
    %59 = tpu.matmul %5, %58, %cst_45 {dimension_numbers = #tpu.dot_dimension_numbers<[1], [0], [0], [1], [0, 0, 1, 1], [], []>} : vector<16x32xf32>, vector<32x8xf32>, vector<16x8xf32> -> vector<16x8xf32>
    %c0_46 = arith.constant 0 : index
    %c1_47 = arith.constant 1 : index
    %c0_48 = arith.constant 0 : index
    %c0_49 = arith.constant 0 : index
    %60 = vector.load %arg6[%c0_46, %c1_47, %c0_48, %c0_49] : memref<1x4x32x8xf32, #tpu.memory_space<vmem>>, vector<1x1x32x8xf32>
    %61 = vector.shape_cast %60 : vector<1x1x32x8xf32> to vector<32x8xf32>
    %cst_50 = arith.constant dense<0.000000e+00> : vector<16x8xf32>
    %62 = tpu.matmul %11, %61, %cst_50 {dimension_numbers = #tpu.dot_dimension_numbers<[1], [0], [0], [1], [0, 0, 1, 1], [], []>} : vector<16x32xf32>, vector<32x8xf32>, vector<16x8xf32> -> vector<16x8xf32>
    %63 = arith.addf %59, %62 : vector<16x8xf32>
    %c0_51 = arith.constant 0 : index
    %c1_52 = arith.constant 1 : index
    %c0_53 = arith.constant 0 : index
    %c0_54 = arith.constant 0 : index
    %64 = vector.load %arg7[%c0_51, %c1_52, %c0_53, %c0_54] : memref<1x4x32x8xf32, #tpu.memory_space<vmem>>, vector<1x1x32x8xf32>
    %65 = vector.shape_cast %64 : vector<1x1x32x8xf32> to vector<32x8xf32>
    %cst_55 = arith.constant dense<0.000000e+00> : vector<16x8xf32>
    %66 = tpu.matmul %5, %65, %cst_55 {dimension_numbers = #tpu.dot_dimension_numbers<[1], [0], [0], [1], [0, 0, 1, 1], [], []>} : vector<16x32xf32>, vector<32x8xf32>, vector<16x8xf32> -> vector<16x8xf32>
    %c0_56 = arith.constant 0 : index
    %c1_57 = arith.constant 1 : index
    %c0_58 = arith.constant 0 : index
    %c0_59 = arith.constant 0 : index
    %67 = vector.load %arg8[%c0_56, %c1_57, %c0_58, %c0_59] : memref<1x4x32x8xf32, #tpu.memory_space<vmem>>, vector<1x1x32x8xf32>
    %68 = vector.shape_cast %67 : vector<1x1x32x8xf32> to vector<32x8xf32>
    %cst_60 = arith.constant dense<0.000000e+00> : vector<16x8xf32>
    %69 = tpu.matmul %11, %68, %cst_60 {dimension_numbers = #tpu.dot_dimension_numbers<[1], [0], [0], [1], [0, 0, 1, 1], [], []>} : vector<16x32xf32>, vector<32x8xf32>, vector<16x8xf32> -> vector<16x8xf32>
    %70 = arith.addf %66, %69 : vector<16x8xf32>
    %71 = vector.shape_cast %56 : vector<16x8xf32> to vector<2x8x8xf32>
    %72 = vector.shape_cast %63 : vector<16x8xf32> to vector<2x8x8xf32>
    %73 = vector.shape_cast %70 : vector<16x8xf32> to vector<2x8x8xf32>
    "tpu.trace_start"() <{level = 10 : i32, message = "bqd,bkd->bqk"}> : () -> ()
    %cst_61 = arith.constant dense<0.000000e+00> : vector<2x8x8xf32>
    %74 = tpu.matmul %71, %72, %cst_61 {dimension_numbers = #tpu.dot_dimension_numbers<[2], [2], [1], [1], [0, 0, 0, 1, 1, 1], [0], [0]>} : vector<2x8x8xf32>, vector<2x8x8xf32>, vector<2x8x8xf32> -> vector<2x8x8xf32>
    %cst_62 = arith.constant 0.000000e+00 : f32
    "tpu.trace_stop"() : () -> ()
    %75 = vector.broadcast %cst_62 : f32 to vector<2x8x8xf32>
    %76 = arith.cmpf oeq, %74, %75 : vector<2x8x8xf32>
    %cst_63 = arith.constant -1.000000e+20 : f32
    %77 = vector.broadcast %cst_63 : f32 to vector<2x8x8xf32>
    %78 = arith.select %76, %77, %74 : vector<2x8x8xi1>, vector<2x8x8xf32>
    %cst_64 = arith.constant 0.000000e+00 : f32
    %79 = vector.broadcast %cst_64 : f32 to vector<2x8x1xf32>
    %80 = arith.cmpf ogt, %4, %79 : vector<2x8x1xf32>
    %cst_65 = arith.constant dense<0xFF800000> : vector<2x8xf32>
    %81 = vector.multi_reduction <maximumf>, %78, %cst_65 [2] : vector<2x8x8xf32> to vector<2x8xf32>
    %82 = vector.shape_cast %81 : vector<2x8xf32> to vector<2x8x1xf32>
    %83 = vector.broadcast %82 : vector<2x8x1xf32> to vector<2x8x8xf32>
    %84 = arith.subf %78, %83 : vector<2x8x8xf32>
    %85 = math.exp %84 : vector<2x8x8xf32>
    %cst_66 = arith.constant dense<0.000000e+00> : vector<2x8xf32>
    %86 = vector.multi_reduction <add>, %85, %cst_66 [2] : vector<2x8x8xf32> to vector<2x8xf32>
    %87 = vector.shape_cast %86 : vector<2x8xf32> to vector<2x8x1xf32>
    %88 = tpu.reciprocal %87 {approx = true} : vector<2x8x1xf32> -> vector<2x8x1xf32>
    %89 = vector.broadcast %88 : vector<2x8x1xf32> to vector<2x8x8xf32>
    %90 = arith.mulf %85, %89 : vector<2x8x8xf32>
    %91 = vector.shape_cast %80 : vector<2x8x1xi1> to vector<2x8x1xi1>
    %92 = vector.broadcast %91 : vector<2x8x1xi1> to vector<2x8x8xi1>
    %93 = arith.select %92, %90, %74 : vector<2x8x8xi1>, vector<2x8x8xf32>
    "tpu.trace_start"() <{level = 10 : i32, message = "bqk,bkd->bqd"}> : () -> ()
    %cst_67 = arith.constant dense<0.000000e+00> : vector<2x8x8xf32>
    %94 = tpu.matmul %93, %73, %cst_67 {dimension_numbers = #tpu.dot_dimension_numbers<[2], [1], [1], [2], [0, 0, 0, 1, 1, 2], [0], [0]>} : vector<2x8x8xf32>, vector<2x8x8xf32>, vector<2x8x8xf32> -> vector<2x8x8xf32>
    "tpu.trace_stop"() : () -> ()
    %95 = vector.shape_cast %94 : vector<2x8x8xf32> to vector<16x8xf32>
    %c0_68 = arith.constant 0 : index
    %c2 = arith.constant 2 : index
    %c0_69 = arith.constant 0 : index
    %c0_70 = arith.constant 0 : index
    %96 = vector.load %arg4[%c0_68, %c2, %c0_69, %c0_70] : memref<1x4x32x8xf32, #tpu.memory_space<vmem>>, vector<1x1x32x8xf32>
    %97 = vector.shape_cast %96 : vector<1x1x32x8xf32> to vector<32x8xf32>
    %cst_71 = arith.constant dense<0.000000e+00> : vector<16x8xf32>
    %98 = tpu.matmul %5, %97, %cst_71 {dimension_numbers = #tpu.dot_dimension_numbers<[1], [0], [0], [1], [0, 0, 1, 1], [], []>} : vector<16x32xf32>, vector<32x8xf32>, vector<16x8xf32> -> vector<16x8xf32>
    %c0_72 = arith.constant 0 : index
    %c2_73 = arith.constant 2 : index
    %c0_74 = arith.constant 0 : index
    %c0_75 = arith.constant 0 : index
    %99 = vector.load %arg5[%c0_72, %c2_73, %c0_74, %c0_75] : memref<1x4x32x8xf32, #tpu.memory_space<vmem>>, vector<1x1x32x8xf32>
    %100 = vector.shape_cast %99 : vector<1x1x32x8xf32> to vector<32x8xf32>
    %cst_76 = arith.constant dense<0.000000e+00> : vector<16x8xf32>
    %101 = tpu.matmul %5, %100, %cst_76 {dimension_numbers = #tpu.dot_dimension_numbers<[1], [0], [0], [1], [0, 0, 1, 1], [], []>} : vector<16x32xf32>, vector<32x8xf32>, vector<16x8xf32> -> vector<16x8xf32>
    %c0_77 = arith.constant 0 : index
    %c2_78 = arith.constant 2 : index
    %c0_79 = arith.constant 0 : index
    %c0_80 = arith.constant 0 : index
    %102 = vector.load %arg6[%c0_77, %c2_78, %c0_79, %c0_80] : memref<1x4x32x8xf32, #tpu.memory_space<vmem>>, vector<1x1x32x8xf32>
    %103 = vector.shape_cast %102 : vector<1x1x32x8xf32> to vector<32x8xf32>
    %cst_81 = arith.constant dense<0.000000e+00> : vector<16x8xf32>
    %104 = tpu.matmul %11, %103, %cst_81 {dimension_numbers = #tpu.dot_dimension_numbers<[1], [0], [0], [1], [0, 0, 1, 1], [], []>} : vector<16x32xf32>, vector<32x8xf32>, vector<16x8xf32> -> vector<16x8xf32>
    %105 = arith.addf %101, %104 : vector<16x8xf32>
    %c0_82 = arith.constant 0 : index
    %c2_83 = arith.constant 2 : index
    %c0_84 = arith.constant 0 : index
    %c0_85 = arith.constant 0 : index
    %106 = vector.load %arg7[%c0_82, %c2_83, %c0_84, %c0_85] : memref<1x4x32x8xf32, #tpu.memory_space<vmem>>, vector<1x1x32x8xf32>
    %107 = vector.shape_cast %106 : vector<1x1x32x8xf32> to vector<32x8xf32>
    %cst_86 = arith.constant dense<0.000000e+00> : vector<16x8xf32>
    %108 = tpu.matmul %5, %107, %cst_86 {dimension_numbers = #tpu.dot_dimension_numbers<[1], [0], [0], [1], [0, 0, 1, 1], [], []>} : vector<16x32xf32>, vector<32x8xf32>, vector<16x8xf32> -> vector<16x8xf32>
    %c0_87 = arith.constant 0 : index
    %c2_88 = arith.constant 2 : index
    %c0_89 = arith.constant 0 : index
    %c0_90 = arith.constant 0 : index
    %109 = vector.load %arg8[%c0_87, %c2_88, %c0_89, %c0_90] : memref<1x4x32x8xf32, #tpu.memory_space<vmem>>, vector<1x1x32x8xf32>
    %110 = vector.shape_cast %109 : vector<1x1x32x8xf32> to vector<32x8xf32>
    %cst_91 = arith.constant dense<0.000000e+00> : vector<16x8xf32>
    %111 = tpu.matmul %11, %110, %cst_91 {dimension_numbers = #tpu.dot_dimension_numbers<[1], [0], [0], [1], [0, 0, 1, 1], [], []>} : vector<16x32xf32>, vector<32x8xf32>, vector<16x8xf32> -> vector<16x8xf32>
    %112 = arith.addf %108, %111 : vector<16x8xf32>
    %113 = vector.shape_cast %98 : vector<16x8xf32> to vector<2x8x8xf32>
    %114 = vector.shape_cast %105 : vector<16x8xf32> to vector<2x8x8xf32>
    %115 = vector.shape_cast %112 : vector<16x8xf32> to vector<2x8x8xf32>
    "tpu.trace_start"() <{level = 10 : i32, message = "bqd,bkd->bqk"}> : () -> ()
    %cst_92 = arith.constant dense<0.000000e+00> : vector<2x8x8xf32>
    %116 = tpu.matmul %113, %114, %cst_92 {dimension_numbers = #tpu.dot_dimension_numbers<[2], [2], [1], [1], [0, 0, 0, 1, 1, 1], [0], [0]>} : vector<2x8x8xf32>, vector<2x8x8xf32>, vector<2x8x8xf32> -> vector<2x8x8xf32>
    %cst_93 = arith.constant 0.000000e+00 : f32
    "tpu.trace_stop"() : () -> ()
    %117 = vector.broadcast %cst_93 : f32 to vector<2x8x8xf32>
    %118 = arith.cmpf oeq, %116, %117 : vector<2x8x8xf32>
    %cst_94 = arith.constant -1.000000e+20 : f32
    %119 = vector.broadcast %cst_94 : f32 to vector<2x8x8xf32>
    %120 = arith.select %118, %119, %116 : vector<2x8x8xi1>, vector<2x8x8xf32>
    %cst_95 = arith.constant 0.000000e+00 : f32
    %121 = vector.broadcast %cst_95 : f32 to vector<2x8x1xf32>
    %122 = arith.cmpf ogt, %4, %121 : vector<2x8x1xf32>
    %cst_96 = arith.constant dense<0xFF800000> : vector<2x8xf32>
    %123 = vector.multi_reduction <maximumf>, %120, %cst_96 [2] : vector<2x8x8xf32> to vector<2x8xf32>
    %124 = vector.shape_cast %123 : vector<2x8xf32> to vector<2x8x1xf32>
    %125 = vector.broadcast %124 : vector<2x8x1xf32> to vector<2x8x8xf32>
    %126 = arith.subf %120, %125 : vector<2x8x8xf32>
    %127 = math.exp %126 : vector<2x8x8xf32>
    %cst_97 = arith.constant dense<0.000000e+00> : vector<2x8xf32>
    %128 = vector.multi_reduction <add>, %127, %cst_97 [2] : vector<2x8x8xf32> to vector<2x8xf32>
    %129 = vector.shape_cast %128 : vector<2x8xf32> to vector<2x8x1xf32>
    %130 = tpu.reciprocal %129 {approx = true} : vector<2x8x1xf32> -> vector<2x8x1xf32>
    %131 = vector.broadcast %130 : vector<2x8x1xf32> to vector<2x8x8xf32>
    %132 = arith.mulf %127, %131 : vector<2x8x8xf32>
    %133 = vector.shape_cast %122 : vector<2x8x1xi1> to vector<2x8x1xi1>
    %134 = vector.broadcast %133 : vector<2x8x1xi1> to vector<2x8x8xi1>
    %135 = arith.select %134, %132, %116 : vector<2x8x8xi1>, vector<2x8x8xf32>
    "tpu.trace_start"() <{level = 10 : i32, message = "bqk,bkd->bqd"}> : () -> ()
    %cst_98 = arith.constant dense<0.000000e+00> : vector<2x8x8xf32>
    %136 = tpu.matmul %135, %115, %cst_98 {dimension_numbers = #tpu.dot_dimension_numbers<[2], [1], [1], [2], [0, 0, 0, 1, 1, 2], [0], [0]>} : vector<2x8x8xf32>, vector<2x8x8xf32>, vector<2x8x8xf32> -> vector<2x8x8xf32>
    "tpu.trace_stop"() : () -> ()
    %137 = vector.shape_cast %136 : vector<2x8x8xf32> to vector<16x8xf32>
    %c0_99 = arith.constant 0 : index
    %c3 = arith.constant 3 : index
    %c0_100 = arith.constant 0 : index
    %c0_101 = arith.constant 0 : index
    %138 = vector.load %arg4[%c0_99, %c3, %c0_100, %c0_101] : memref<1x4x32x8xf32, #tpu.memory_space<vmem>>, vector<1x1x32x8xf32>
    %139 = vector.shape_cast %138 : vector<1x1x32x8xf32> to vector<32x8xf32>
    %cst_102 = arith.constant dense<0.000000e+00> : vector<16x8xf32>
    %140 = tpu.matmul %5, %139, %cst_102 {dimension_numbers = #tpu.dot_dimension_numbers<[1], [0], [0], [1], [0, 0, 1, 1], [], []>} : vector<16x32xf32>, vector<32x8xf32>, vector<16x8xf32> -> vector<16x8xf32>
    %c0_103 = arith.constant 0 : index
    %c3_104 = arith.constant 3 : index
    %c0_105 = arith.constant 0 : index
    %c0_106 = arith.constant 0 : index
    %141 = vector.load %arg5[%c0_103, %c3_104, %c0_105, %c0_106] : memref<1x4x32x8xf32, #tpu.memory_space<vmem>>, vector<1x1x32x8xf32>
    %142 = vector.shape_cast %141 : vector<1x1x32x8xf32> to vector<32x8xf32>
    %cst_107 = arith.constant dense<0.000000e+00> : vector<16x8xf32>
    %143 = tpu.matmul %5, %142, %cst_107 {dimension_numbers = #tpu.dot_dimension_numbers<[1], [0], [0], [1], [0, 0, 1, 1], [], []>} : vector<16x32xf32>, vector<32x8xf32>, vector<16x8xf32> -> vector<16x8xf32>
    %c0_108 = arith.constant 0 : index
    %c3_109 = arith.constant 3 : index
    %c0_110 = arith.constant 0 : index
    %c0_111 = arith.constant 0 : index
    %144 = vector.load %arg6[%c0_108, %c3_109, %c0_110, %c0_111] : memref<1x4x32x8xf32, #tpu.memory_space<vmem>>, vector<1x1x32x8xf32>
    %145 = vector.shape_cast %144 : vector<1x1x32x8xf32> to vector<32x8xf32>
    %cst_112 = arith.constant dense<0.000000e+00> : vector<16x8xf32>
    %146 = tpu.matmul %11, %145, %cst_112 {dimension_numbers = #tpu.dot_dimension_numbers<[1], [0], [0], [1], [0, 0, 1, 1], [], []>} : vector<16x32xf32>, vector<32x8xf32>, vector<16x8xf32> -> vector<16x8xf32>
    %147 = arith.addf %143, %146 : vector<16x8xf32>
    %c0_113 = arith.constant 0 : index
    %c3_114 = arith.constant 3 : index
    %c0_115 = arith.constant 0 : index
    %c0_116 = arith.constant 0 : index
    %148 = vector.load %arg7[%c0_113, %c3_114, %c0_115, %c0_116] : memref<1x4x32x8xf32, #tpu.memory_space<vmem>>, vector<1x1x32x8xf32>
    %149 = vector.shape_cast %148 : vector<1x1x32x8xf32> to vector<32x8xf32>
    %cst_117 = arith.constant dense<0.000000e+00> : vector<16x8xf32>
    %150 = tpu.matmul %5, %149, %cst_117 {dimension_numbers = #tpu.dot_dimension_numbers<[1], [0], [0], [1], [0, 0, 1, 1], [], []>} : vector<16x32xf32>, vector<32x8xf32>, vector<16x8xf32> -> vector<16x8xf32>
    %c0_118 = arith.constant 0 : index
    %c3_119 = arith.constant 3 : index
    %c0_120 = arith.constant 0 : index
    %c0_121 = arith.constant 0 : index
    %151 = vector.load %arg8[%c0_118, %c3_119, %c0_120, %c0_121] : memref<1x4x32x8xf32, #tpu.memory_space<vmem>>, vector<1x1x32x8xf32>
    %152 = vector.shape_cast %151 : vector<1x1x32x8xf32> to vector<32x8xf32>
    %cst_122 = arith.constant dense<0.000000e+00> : vector<16x8xf32>
    %153 = tpu.matmul %11, %152, %cst_122 {dimension_numbers = #tpu.dot_dimension_numbers<[1], [0], [0], [1], [0, 0, 1, 1], [], []>} : vector<16x32xf32>, vector<32x8xf32>, vector<16x8xf32> -> vector<16x8xf32>
    %154 = arith.addf %150, %153 : vector<16x8xf32>
    %155 = vector.shape_cast %140 : vector<16x8xf32> to vector<2x8x8xf32>
    %156 = vector.shape_cast %147 : vector<16x8xf32> to vector<2x8x8xf32>
    %157 = vector.shape_cast %154 : vector<16x8xf32> to vector<2x8x8xf32>
    "tpu.trace_start"() <{level = 10 : i32, message = "bqd,bkd->bqk"}> : () -> ()
    %cst_123 = arith.constant dense<0.000000e+00> : vector<2x8x8xf32>
    %158 = tpu.matmul %155, %156, %cst_123 {dimension_numbers = #tpu.dot_dimension_numbers<[2], [2], [1], [1], [0, 0, 0, 1, 1, 1], [0], [0]>} : vector<2x8x8xf32>, vector<2x8x8xf32>, vector<2x8x8xf32> -> vector<2x8x8xf32>
    %cst_124 = arith.constant 0.000000e+00 : f32
    "tpu.trace_stop"() : () -> ()
    %159 = vector.broadcast %cst_124 : f32 to vector<2x8x8xf32>
    %160 = arith.cmpf oeq, %158, %159 : vector<2x8x8xf32>
    %cst_125 = arith.constant -1.000000e+20 : f32
    %161 = vector.broadcast %cst_125 : f32 to vector<2x8x8xf32>
    %162 = arith.select %160, %161, %158 : vector<2x8x8xi1>, vector<2x8x8xf32>
    %cst_126 = arith.constant 0.000000e+00 : f32
    %163 = vector.broadcast %cst_126 : f32 to vector<2x8x1xf32>
    %164 = arith.cmpf ogt, %4, %163 : vector<2x8x1xf32>
    %cst_127 = arith.constant dense<0xFF800000> : vector<2x8xf32>
    %165 = vector.multi_reduction <maximumf>, %162, %cst_127 [2] : vector<2x8x8xf32> to vector<2x8xf32>
    %166 = vector.shape_cast %165 : vector<2x8xf32> to vector<2x8x1xf32>
    %167 = vector.broadcast %166 : vector<2x8x1xf32> to vector<2x8x8xf32>
    %168 = arith.subf %162, %167 : vector<2x8x8xf32>
    %169 = math.exp %168 : vector<2x8x8xf32>
    %cst_128 = arith.constant dense<0.000000e+00> : vector<2x8xf32>
    %170 = vector.multi_reduction <add>, %169, %cst_128 [2] : vector<2x8x8xf32> to vector<2x8xf32>
    %171 = vector.shape_cast %170 : vector<2x8xf32> to vector<2x8x1xf32>
    %172 = tpu.reciprocal %171 {approx = true} : vector<2x8x1xf32> -> vector<2x8x1xf32>
    %173 = vector.broadcast %172 : vector<2x8x1xf32> to vector<2x8x8xf32>
    %174 = arith.mulf %169, %173 : vector<2x8x8xf32>
    %175 = vector.shape_cast %164 : vector<2x8x1xi1> to vector<2x8x1xi1>
    %176 = vector.broadcast %175 : vector<2x8x1xi1> to vector<2x8x8xi1>
    %177 = arith.select %176, %174, %158 : vector<2x8x8xi1>, vector<2x8x8xf32>
    "tpu.trace_start"() <{level = 10 : i32, message = "bqk,bkd->bqd"}> : () -> ()
    %cst_129 = arith.constant dense<0.000000e+00> : vector<2x8x8xf32>
    %178 = tpu.matmul %177, %157, %cst_129 {dimension_numbers = #tpu.dot_dimension_numbers<[2], [1], [1], [2], [0, 0, 0, 1, 1, 2], [0], [0]>} : vector<2x8x8xf32>, vector<2x8x8xf32>, vector<2x8x8xf32> -> vector<2x8x8xf32>
    "tpu.trace_stop"() : () -> ()
    %179 = vector.shape_cast %178 : vector<2x8x8xf32> to vector<16x8xf32>
    %180 = tpu.concatenate %53, %95, %137, %179 in 1 : vector<16x8xf32>, vector<16x8xf32>, vector<16x8xf32>, vector<16x8xf32> -> vector<16x32xf32>
    %cst_130 = arith.constant 0.000000e+00 : f32
    %181 = vector.broadcast %cst_130 : f32 to vector<16x32xf32>
    %182 = arith.cmpf ogt, %180, %181 : vector<16x32xf32>
    %cst_131 = arith.constant 0.00999999977 : f32
    %183 = vector.broadcast %cst_131 : f32 to vector<16x32xf32>
    %184 = arith.mulf %183, %180 : vector<16x32xf32>
    %185 = arith.select %182, %180, %184 : vector<16x32xi1>, vector<16x32xf32>
    %186 = arith.addf %185, %5 : vector<16x32xf32>
    %c0_132 = arith.constant 0 : index
    %c0_133 = arith.constant 0 : index
    %c0_134 = arith.constant 0 : index
    %187 = vector.load %arg9[%c0_132, %c0_133, %c0_134] : memref<1x1x32xf32, #tpu.memory_space<vmem>>, vector<1x1x32xf32>
    %188 = vector.shape_cast %187 : vector<1x1x32xf32> to vector<1x32xf32>
    %c0_135 = arith.constant 0 : index
    %c0_136 = arith.constant 0 : index
    %c0_137 = arith.constant 0 : index
    %189 = vector.load %arg10[%c0_135, %c0_136, %c0_137] : memref<1x1x32xf32, #tpu.memory_space<vmem>>, vector<1x1x32xf32>
    %190 = vector.shape_cast %189 : vector<1x1x32xf32> to vector<1x32xf32>
    %cst_138 = arith.constant dense<0.000000e+00> : vector<16xf32>
    %191 = vector.multi_reduction <add>, %186, %cst_138 [1] : vector<16x32xf32> to vector<16xf32>
    %192 = vector.shape_cast %191 : vector<16xf32> to vector<16x1xf32>
    %cst_139 = arith.constant 3.200000e+01 : f32
    %193 = vector.broadcast %cst_139 : f32 to vector<16x1xf32>
    %194 = arith.divf %192, %193 : vector<16x1xf32>
    %195 = vector.broadcast %194 : vector<16x1xf32> to vector<16x32xf32>
    %196 = arith.subf %186, %195 : vector<16x32xf32>
    %197 = arith.mulf %196, %196 : vector<16x32xf32>
    %cst_140 = arith.constant dense<0.000000e+00> : vector<16xf32>
    %198 = vector.multi_reduction <add>, %197, %cst_140 [1] : vector<16x32xf32> to vector<16xf32>
    %199 = vector.shape_cast %198 : vector<16xf32> to vector<16x1xf32>
    %cst_141 = arith.constant 3.200000e+01 : f32
    %200 = vector.broadcast %cst_141 : f32 to vector<16x1xf32>
    %201 = arith.divf %199, %200 : vector<16x1xf32>
    %202 = vector.broadcast %194 : vector<16x1xf32> to vector<16x32xf32>
    %203 = arith.subf %186, %202 : vector<16x32xf32>
    %cst_142 = arith.constant 9.99999974E-6 : f32
    %204 = vector.broadcast %cst_142 : f32 to vector<16x1xf32>
    %205 = arith.addf %201, %204 : vector<16x1xf32>
    %206 = math.rsqrt %205 : vector<16x1xf32>
    %207 = vector.broadcast %206 : vector<16x1xf32> to vector<16x32xf32>
    %208 = arith.mulf %203, %207 : vector<16x32xf32>
    %209 = vector.broadcast %188 : vector<1x32xf32> to vector<16x32xf32>
    %210 = arith.mulf %208, %209 : vector<16x32xf32>
    %211 = vector.broadcast %190 : vector<1x32xf32> to vector<16x32xf32>
    %212 = arith.addf %210, %211 : vector<16x32xf32>
    %c0_143 = arith.constant 0 : index
    %c0_144 = arith.constant 0 : index
    %c0_145 = arith.constant 0 : index
    %213 = vector.load %arg11[%c0_143, %c0_144, %c0_145] : memref<1x32x64xf32, #tpu.memory_space<vmem>>, vector<1x32x64xf32>
    %214 = vector.shape_cast %213 : vector<1x32x64xf32> to vector<32x64xf32>
    %cst_146 = arith.constant dense<0.000000e+00> : vector<16x64xf32>
    %215 = tpu.matmul %212, %214, %cst_146 {dimension_numbers = #tpu.dot_dimension_numbers<[1], [0], [0], [1], [0, 0, 1, 1], [], []>} : vector<16x32xf32>, vector<32x64xf32>, vector<16x64xf32> -> vector<16x64xf32>
    %c0_147 = arith.constant 0 : index
    %c0_148 = arith.constant 0 : index
    %c0_149 = arith.constant 0 : index
    %216 = vector.load %arg12[%c0_147, %c0_148, %c0_149] : memref<1x1x64xf32, #tpu.memory_space<vmem>>, vector<1x1x64xf32>
    %217 = vector.shape_cast %216 : vector<1x1x64xf32> to vector<1x64xf32>
    %218 = vector.broadcast %217 : vector<1x64xf32> to vector<16x64xf32>
    %219 = arith.addf %215, %218 : vector<16x64xf32>
    %cst_150 = arith.constant 0.000000e+00 : f32
    %220 = vector.broadcast %cst_150 : f32 to vector<16x64xf32>
    %221 = arith.cmpf ogt, %219, %220 : vector<16x64xf32>
    %cst_151 = arith.constant 0.00999999977 : f32
    %222 = vector.broadcast %cst_151 : f32 to vector<16x64xf32>
    %223 = arith.mulf %222, %219 : vector<16x64xf32>
    %224 = arith.select %221, %219, %223 : vector<16x64xi1>, vector<16x64xf32>
    %c0_152 = arith.constant 0 : index
    %c0_153 = arith.constant 0 : index
    %c0_154 = arith.constant 0 : index
    %225 = vector.load %arg13[%c0_152, %c0_153, %c0_154] : memref<1x64x32xf32, #tpu.memory_space<vmem>>, vector<1x64x32xf32>
    %226 = vector.shape_cast %225 : vector<1x64x32xf32> to vector<64x32xf32>
    %cst_155 = arith.constant dense<0.000000e+00> : vector<16x32xf32>
    %227 = tpu.matmul %224, %226, %cst_155 {dimension_numbers = #tpu.dot_dimension_numbers<[1], [0], [0], [1], [0, 0, 1, 1], [], []>} : vector<16x64xf32>, vector<64x32xf32>, vector<16x32xf32> -> vector<16x32xf32>
    %c0_156 = arith.constant 0 : index
    %c0_157 = arith.constant 0 : index
    %c0_158 = arith.constant 0 : index
    %228 = vector.load %arg14[%c0_156, %c0_157, %c0_158] : memref<1x1x32xf32, #tpu.memory_space<vmem>>, vector<1x1x32xf32>
    %229 = vector.shape_cast %228 : vector<1x1x32xf32> to vector<1x32xf32>
    %230 = vector.broadcast %229 : vector<1x32xf32> to vector<16x32xf32>
    %231 = arith.addf %227, %230 : vector<16x32xf32>
    %232 = arith.addf %231, %212 : vector<16x32xf32>
    %c0_159 = arith.constant 0 : index
    %c0_160 = arith.constant 0 : index
    %c0_161 = arith.constant 0 : index
    %233 = vector.load %arg15[%c0_159, %c0_160, %c0_161] : memref<1x1x32xf32, #tpu.memory_space<vmem>>, vector<1x1x32xf32>
    %234 = vector.shape_cast %233 : vector<1x1x32xf32> to vector<1x32xf32>
    %c0_162 = arith.constant 0 : index
    %c0_163 = arith.constant 0 : index
    %c0_164 = arith.constant 0 : index
    %235 = vector.load %arg16[%c0_162, %c0_163, %c0_164] : memref<1x1x32xf32, #tpu.memory_space<vmem>>, vector<1x1x32xf32>
    %236 = vector.shape_cast %235 : vector<1x1x32xf32> to vector<1x32xf32>
    %cst_165 = arith.constant dense<0.000000e+00> : vector<16xf32>
    %237 = vector.multi_reduction <add>, %232, %cst_165 [1] : vector<16x32xf32> to vector<16xf32>
    %238 = vector.shape_cast %237 : vector<16xf32> to vector<16x1xf32>
    %cst_166 = arith.constant 3.200000e+01 : f32
    %239 = vector.broadcast %cst_166 : f32 to vector<16x1xf32>
    %240 = arith.divf %238, %239 : vector<16x1xf32>
    %241 = vector.broadcast %240 : vector<16x1xf32> to vector<16x32xf32>
    %242 = arith.subf %232, %241 : vector<16x32xf32>
    %243 = arith.mulf %242, %242 : vector<16x32xf32>
    %cst_167 = arith.constant dense<0.000000e+00> : vector<16xf32>
    %244 = vector.multi_reduction <add>, %243, %cst_167 [1] : vector<16x32xf32> to vector<16xf32>
    %245 = vector.shape_cast %244 : vector<16xf32> to vector<16x1xf32>
    %cst_168 = arith.constant 3.200000e+01 : f32
    %246 = vector.broadcast %cst_168 : f32 to vector<16x1xf32>
    %247 = arith.divf %245, %246 : vector<16x1xf32>
    %248 = vector.broadcast %240 : vector<16x1xf32> to vector<16x32xf32>
    %249 = arith.subf %232, %248 : vector<16x32xf32>
    %cst_169 = arith.constant 9.99999974E-6 : f32
    %250 = vector.broadcast %cst_169 : f32 to vector<16x1xf32>
    %251 = arith.addf %247, %250 : vector<16x1xf32>
    %252 = math.rsqrt %251 : vector<16x1xf32>
    %253 = vector.broadcast %252 : vector<16x1xf32> to vector<16x32xf32>
    %254 = arith.mulf %249, %253 : vector<16x32xf32>
    %255 = vector.broadcast %234 : vector<1x32xf32> to vector<16x32xf32>
    %256 = arith.mulf %254, %255 : vector<16x32xf32>
    %257 = vector.broadcast %236 : vector<1x32xf32> to vector<16x32xf32>
    %258 = arith.addf %256, %257 : vector<16x32xf32>
    %259 = vector.broadcast %6 : vector<16x1xf32> to vector<16x32xf32>
    %260 = arith.mulf %259, %258 : vector<16x32xf32>
    %261 = vector.shape_cast %260 : vector<16x32xf32> to vector<2x8x32xf32>
    %c0_170 = arith.constant 0 : index
    %c0_171 = arith.constant 0 : index
    %c0_172 = arith.constant 0 : index
    %262 = vector.load %arg18[%c0_170, %c0_171, %c0_172] : memref<2x8x32xf32, #tpu.memory_space<vmem>>, vector<2x8x32xf32>
    tpu.vector_store %arg18[%c0_170, %c0_171, %c0_172], %261 {strides = array<i32>} : memref<2x8x32xf32, #tpu.memory_space<vmem>>, vector<2x8x32xf32>,
    %c1_i32 = arith.constant 1 : i32
    %263 = arith.cmpi eq, %arg1, %c1_i32 : i32
    %264 = arith.extui %263 : i1 to i32
    %c0_i32_173 = arith.constant 0 : i32
    %265 = arith.cmpi ne, %264, %c0_i32_173 : i32
    scf.if %265 {
      %c0_174 = arith.constant 0 : index
      %c0_175 = arith.constant 0 : index
      %c0_176 = arith.constant 0 : index
      %266 = vector.load %arg17[%c0_174, %c0_175, %c0_176] : memref<2x8x32xf32, #tpu.memory_space<vmem>>, vector<2x8x32xf32>
      tpu.vector_store %arg17[%c0_174, %c0_175, %c0_176], %261 {strides = array<i32>} : memref<2x8x32xf32, #tpu.memory_space<vmem>>, vector<2x8x32xf32>,
    } else {
    }
    return
  }
  func.func @transform_0(%arg0: i32, %arg1: i32) -> (i32, i32, i32) {
    %c0_i32 = arith.constant 0 : i32
    %c0_i32_0 = arith.constant 0 : i32
    %c0_i32_1 = arith.constant 0 : i32
    return %arg0, %c0_i32, %c0_i32_0 : i32, i32, i32
  }
  func.func @transform_1(%arg0: i32, %arg1: i32) -> (i32, i32, i32) {
    %c0_i32 = arith.constant 0 : i32
    %c0_i32_0 = arith.constant 0 : i32
    %c0_i32_1 = arith.constant 0 : i32
    return %arg0, %c0_i32, %c0_i32_0 : i32, i32, i32
  }
  func.func @transform_2(%arg0: i32, %arg1: i32) -> (i32, i32, i32, i32) {
    %c0_i32 = arith.constant 0 : i32
    %c0_i32_0 = arith.constant 0 : i32
    %c0_i32_1 = arith.constant 0 : i32
    %c0_i32_2 = arith.constant 0 : i32
    return %arg1, %c0_i32, %c0_i32_0, %c0_i32_1 : i32, i32, i32, i32
  }
  func.func @transform_3(%arg0: i32, %arg1: i32) -> (i32, i32, i32, i32) {
    %c0_i32 = arith.constant 0 : i32
    %c0_i32_0 = arith.constant 0 : i32
    %c0_i32_1 = arith.constant 0 : i32
    %c0_i32_2 = arith.constant 0 : i32
    return %arg1, %c0_i32, %c0_i32_0, %c0_i32_1 : i32, i32, i32, i32
  }
  func.func @transform_4(%arg0: i32, %arg1: i32) -> (i32, i32, i32, i32) {
    %c0_i32 = arith.constant 0 : i32
    %c0_i32_0 = arith.constant 0 : i32
    %c0_i32_1 = arith.constant 0 : i32
    %c0_i32_2 = arith.constant 0 : i32
    return %arg1, %c0_i32, %c0_i32_0, %c0_i32_1 : i32, i32, i32, i32
  }
  func.func @transform_5(%arg0: i32, %arg1: i32) -> (i32, i32, i32, i32) {
    %c0_i32 = arith.constant 0 : i32
    %c0_i32_0 = arith.constant 0 : i32
    %c0_i32_1 = arith.constant 0 : i32
    %c0_i32_2 = arith.constant 0 : i32
    return %arg1, %c0_i32, %c0_i32_0, %c0_i32_1 : i32, i32, i32, i32
  }
  func.func @transform_6(%arg0: i32, %arg1: i32) -> (i32, i32, i32, i32) {
    %c0_i32 = arith.constant 0 : i32
    %c0_i32_0 = arith.constant 0 : i32
    %c0_i32_1 = arith.constant 0 : i32
    %c0_i32_2 = arith.constant 0 : i32
    return %arg1, %c0_i32, %c0_i32_0, %c0_i32_1 : i32, i32, i32, i32
  }
  func.func @transform_7(%arg0: i32, %arg1: i32) -> (i32, i32, i32) {
    %c0_i32 = arith.constant 0 : i32
    %c0_i32_0 = arith.constant 0 : i32
    %c0_i32_1 = arith.constant 0 : i32
    return %arg1, %c0_i32, %c0_i32_0 : i32, i32, i32
  }
  func.func @transform_8(%arg0: i32, %arg1: i32) -> (i32, i32, i32) {
    %c0_i32 = arith.constant 0 : i32
    %c0_i32_0 = arith.constant 0 : i32
    %c0_i32_1 = arith.constant 0 : i32
    return %arg1, %c0_i32, %c0_i32_0 : i32, i32, i32
  }
  func.func @transform_9(%arg0: i32, %arg1: i32) -> (i32, i32, i32) {
    %c0_i32 = arith.constant 0 : i32
    %c0_i32_0 = arith.constant 0 : i32
    %c0_i32_1 = arith.constant 0 : i32
    return %arg1, %c0_i32, %c0_i32_0 : i32, i32, i32
  }
  func.func @transform_10(%arg0: i32, %arg1: i32) -> (i32, i32, i32) {
    %c0_i32 = arith.constant 0 : i32
    %c0_i32_0 = arith.constant 0 : i32
    %c0_i32_1 = arith.constant 0 : i32
    return %arg1, %c0_i32, %c0_i32_0 : i32, i32, i32
  }
  func.func @transform_11(%arg0: i32, %arg1: i32) -> (i32, i32, i32) {
    %c0_i32 = arith.constant 0 : i32
    %c0_i32_0 = arith.constant 0 : i32
    %c0_i32_1 = arith.constant 0 : i32
    return %arg1, %c0_i32, %c0_i32_0 : i32, i32, i32
  }
  func.func @transform_12(%arg0: i32, %arg1: i32) -> (i32, i32, i32) {
    %c0_i32 = arith.constant 0 : i32
    %c0_i32_0 = arith.constant 0 : i32
    %c0_i32_1 = arith.constant 0 : i32
    return %arg1, %c0_i32, %c0_i32_0 : i32, i32, i32
  }
  func.func @transform_13(%arg0: i32, %arg1: i32) -> (i32, i32, i32) {
    %c0_i32 = arith.constant 0 : i32
    %c0_i32_0 = arith.constant 0 : i32
    %c0_i32_1 = arith.constant 0 : i32
    return %arg1, %c0_i32, %c0_i32_0 : i32, i32, i32
  }
  func.func @transform_14(%arg0: i32, %arg1: i32) -> (i32, i32, i32) {
    %c0_i32 = arith.constant 0 : i32
    %c0_i32_0 = arith.constant 0 : i32
    %c0_i32_1 = arith.constant 0 : i32
    return %arg1, %c0_i32, %c0_i32_0 : i32, i32, i32
  }
  func.func @transform_15(%arg0: i32, %arg1: i32) -> (i32, i32, i32) {
    %c0_i32 = arith.constant 0 : i32
    %c0_i32_0 = arith.constant 0 : i32
    %c0_i32_1 = arith.constant 0 : i32
    return %arg0, %c0_i32, %c0_i32_0 : i32, i32, i32
  }
}

</mosaic_0001>

<bundles_post_ra>
// kernel: tpu_custom_call.1
= control target key start
LH: loop header
LB: loop body
LE: loop exit
PB: predicated region body
PF: predicated region fallthrough
CT: control target
= control target key end

     0   :  { %s5864_s0 = inlined_call_operand.vmem [shape: f32[2,8,32], index: 0, kind: input, shape index: {}]   ;;  %s5865_s1 = inlined_call_operand.vmem [shape: f32[2,8,1], index: 1, kind: input, shape index: {}]   ;;  %s5866_s2 = inlined_call_operand.vmem [shape: f32[2,4,32,8], index: 2, kind: input, shape index: {}]   ;;  %s5867_s3 = inlined_call_operand.vmem [shape: f32[2,4,32,8], index: 3, kind: input, shape index: {}]   ;;  %s5868_s4 = inlined_call_operand.vmem [shape: f32[2,4,32,8], index: 4, kind: input, shape index: {}]   ;;  %s5869_s5 = inlined_call_operand.vmem [shape: f32[2,4,32,8], index: 5, kind: input, shape index: {}]   ;;  %s5870_s6 = inlined_call_operand.vmem [shape: f32[2,4,32,8], index: 6, kind: input, shape index: {}]   ;;  %s5871_s7 = inlined_call_operand.vmem [shape: f32[2,1,32], index: 7, kind: input, shape index: {}]   ;;  %s5872_s8 = inlined_call_operand.vmem [shape: f32[2,1,32], index: 8, kind: input, shape index: {}]   ;;  %s5873_s9 = inlined_call_operand.vmem [shape: f32[2,32,64], index: 9, kind: input, shape index: {}]   ;;  %s5874_s10 = inlined_call_operand.vmem [shape: f32[2,1,64], index: 10, kind: input, shape index: {}]   ;;  %s5875_s11 = inlined_call_operand.vmem [shape: f32[2,64,32], index: 11, kind: input, shape index: {}]   ;;  %s5876_s12 = inlined_call_operand.vmem [shape: f32[2,1,32], index: 12, kind: input, shape index: {}]   ;;  %s5877_s13 = inlined_call_operand.vmem [shape: f32[2,1,32], index: 13, kind: input, shape index: {}]   ;;  %s5878_s14 = inlined_call_operand.vmem [shape: f32[2,1,32], index: 14, kind: input, shape index: {}]   ;;  %s5879_s15 = inlined_call_operand.hbm [shape: f32[2,8,32], index: 15, kind: output, shape index: {}]  }
   0x1   :  { %5885 = sst [smem:[#allocation10_spill]] %s5865_s1 }
   0x2   :  { %5886 = sst [smem:[#allocation11_spill]] %s5866_s2 }
   0x3   :  { %5887 = sst [smem:[#allocation12_spill]] %s5867_s3 }
   0x4   :  { %5888 = sst [smem:[#allocation13_spill]] %s5868_s4 }
   0x5   :  { %5889 = sst [smem:[#allocation14_spill]] %s5869_s5 }
   0x6   :  { %5890 = sst [smem:[#allocation15_spill]] %s5871_s7 }
   0x7   :  { %5891 = sst [smem:[#allocation16_spill]] %s5879_s15 }
   0x8   :  { %20 = vsyncpa [#allocation4], 0  ;;  %s5348_s18 = smov 0   ;;  %s5350_s19 = smov 0  }
   0x9   :  { %s5352_s20 = smov 0  }
   0xa LB: > { %5892 = sst [smem:[#allocation6_spill]] %s5254_s19  ;;  %s35_s22 = sadd.s32 1, %s5254_s19  ;;  %s5258_s20 = sphi %s5352_s20, %s26_s20   ;;  %s5254_s19 = sphi %s5350_s19, %s5913_s19   ;;  %s5250_s18 = sphi %s5348_s18, %s5912_s18  }
   0xb   : > { %5893 = sst [smem:[#allocation7_spill]] %s5258_s20  ;;  %p36_p0 = scmp.ge.s32.totalorder %s35_s22, 2 }
   0xc   : > { %p4264_p1 = scmp.ge.s32.totalorder %s5258_s20, 1  ;;  %p580_p2 = scmp.lt.s32.totalorder %s5258_s20, 3 }
   0xd   : > { %s5915_s22 = smov (%p36_p0, %s35_s22), 0 }
   0xe   : > { %5894 = sst [smem:[#allocation8_spill]] %s5915_s22  ;;  %p581_p3 = pnand %p4264_p1, %p580_p2 }
  0x10   : > { %584 = sbr.rel (%p581_p3) target bundleno = 4663 (0x1237), region = 80 }
  0x17   : > { %p693_p4 = scmp.lt.s32.totalorder %s5250_s18, 1  ;;  %s5896_s2 = sld [smem:[#allocation11_spill]] }
  0x18   : > { %s5897_s3 = sld [smem:[#allocation12_spill]]  ;;  %s5898_s4 = sld [smem:[#allocation13_spill]] }
  0x19   : > { %s5371_s23 = scalar_select %p693_p4, %s5250_s18, 1 }
  0x1a   : > { %s5899_s5 = sld [smem:[#allocation14_spill]]  ;;  %p4279_p5 = scmp.ne.s32.totalorder %s5250_s18, 0 }
  0x1b   : > { %s4419_s24 = sshll.u32 %s5371_s23, 7  ;;  %s4424_s17 = sshll.u32 %s5371_s23, 5  ;;  %v751_v0 = vld [vmem:[%s5864_s0] sm:$0xff] (!%p4279_p5)  ;;  %vm753_vm0 = vcmask (!%p4279_p5), 261120   ;;  %v752_v1 = vld [vmem:[%s5864_s0 + $0x8] sm:$0xff] (!%p4279_p5) }
  0x1c   : > { %s5401_s28 = scalar_lea.vmem %s5870_s6, %s4419_s24  ;;  %s5415_s1 = scalar_lea.vmem %s5873_s9, %s4424_s17  ;;  %754 = vst.msk [vmem:[#allocation2] sm:$0xff] (!%p4279_p5), %vm753_vm0, %v751_v0  ;;  %755 = vst.msk [vmem:[#allocation2 + $0x8] sm:$0xff] (!%p4279_p5), %vm753_vm0, %v752_v1 }
  0x1d   : > { %s5381_s30 = scalar_lea.vmem %s5896_s2, %s4419_s24  ;;  %s4425_s20 = sshll.u32 %s5371_s23, 6 }
  0x1e   : > { %s5386_s21 = scalar_lea.vmem %s5897_s3, %s4419_s24  ;;  %s5391_s15 = scalar_lea.vmem %s5898_s4, %s4419_s24 }
  0x1f   : > { %s739_s2 = scalar_lea.vmem %s5876_s12, %s5371_s23  ;;  %s742_s3 = scalar_lea.vmem %s5877_s13, %s5371_s23 }
  0x20   : > { %s5396_s25 = scalar_lea.vmem %s5899_s5, %s4419_s24  ;;  %s5421_s24 = scalar_lea.vmem %s5875_s11, %s4425_s20 }
  0x21   : > { %5900 = sst [smem:[#allocation9_spill]] %s5396_s25  ;;  %s745_s4 = scalar_lea.vmem %s5878_s14, %s5371_s23 }
  0x22   : > { %750 = sbr.rel (%p4279_p5) target bundleno = 41 (0x29), region = 84 }
  0x29 PF: > { %s5901_s27 = sld [smem:[#allocation10_spill]]  ;;  %v780_v3 = vld [vmem:[%s5381_s30] sm:$0xff]  ;;  %vm784_vm1 = vcmask 261120   ;;  %v5260_v4 = vmov 0   ;;  %v781_v5 = vld [vmem:[%s5381_s30 + $0x8] sm:$0xff]  ;;  %v782_v6 = vld [vmem:[%s5381_s30 + $0x10] sm:$0xff]  ;;  %v770_v31 = vlaneseq  ;;  %s5905_s25 = scalar_lea.vmem %s5872_s8, %s5371_s23 }
  0x2a   : > { %5162 = vset.pattern.permute.xlu0 %v5260_v4  ;;  %v783_v7 = vld [vmem:[%s5381_s30 + $0x18] sm:$0xff]  ;;  %5163 = vset.pattern.permute.xlu1 %v5260_v4  ;;  %v4924_v8 = vpack.c.bf16 %v781_v5, %v780_v3  ;;  %v5454_v10 = vld [vmem:[#allocation2] sm:$0xff]  ;;  %v871_v12 = vld [vmem:[%s5391_s15 + $0x8] sm:$0xff]  ;;  %s5902_s29 = sld [smem:[#allocation9_spill]]  ;;  %v5261_v48 = vmov 0.0   ;;  %vm5262_vm2 = vmmov 0   ;;  %s5906_s19 = scalar_lea.vmem %s5874_s10, %s5371_s23 }
  0x2b   : > { %v4928_v9 = vpack.c.bf16 %v783_v7, %v782_v6  ;;  %v870_v11 = vld [vmem:[%s5391_s15] sm:$0xff]  ;;  %4602 = vmatprep.mubr.msk.f32.mxu0 %vm784_vm1, %v5454_v10  ;;  %v1035_v16 = vld [vmem:[%s5401_s28 + $0x8] sm:$0xff]  ;;  %v872_v17 = vld [vmem:[%s5391_s15 + $0x10] sm:$0xff]  ;;  %v771_v32 = vshrl.u32 %v770_v31, 7  ;;  %vm1188_vm3 = vcmask 64512   ;;  %vm3734_vm0 = vcmask 195584  }
  0x2c   : > { %v4932_v14 = vpack.c.bf16 %v871_v12, %v870_v11  ;;  %v1034_v15 = vld [vmem:[%s5401_s28] sm:$0xff]  ;;  %4925 = vmatprep.subr.bf16.mxu0 %v4924_v8  ;;  %v873_v18 = vld [vmem:[%s5391_s15 + $0x18] sm:$0xff]  ;;  %v867_v21 = vld [vmem:[%s5386_s21 + $0x8] sm:$0xff]  ;;  %s5903_s7 = sld [smem:[#allocation15_spill]]  ;;  %p4414_p6 = scmp.ne.s32.totalorder %s5250_s18, 1 }
  0x2d   : > { %4927 = vmatpush3.bf16.msra.mxu0 %v4924_v8  ;;  %v4936_v19 = vpack.c.bf16 %v873_v18, %v872_v17  ;;  %v866_v20 = vld [vmem:[%s5386_s21] sm:$0xff]  ;;  %v4948_v22 = vpack.c.bf16 %v1035_v16, %v1034_v15  ;;  %v1036_v23 = vld [vmem:[%s5401_s28 + $0x10] sm:$0xff]  ;;  %v1037_v24 = vld [vmem:[%s5401_s28 + $0x18] sm:$0xff]  ;;  %v772_v33 = vsub.s32 0, %v771_v32 }
  0x2e   : > { %4933 = vmatprep.subr.bf16.mxu1 %v4932_v14  ;;  %4929 = vmatprep.subr.bf16.mxu0 %v4928_v9  ;;  %v4940_v25 = vpack.c.bf16 %v867_v21, %v866_v20  ;;  %v5474_v26 = vld [vmem:[#allocation2 + $0x8] sm:$0xff]  ;;  %v4952_v27 = vpack.c.bf16 %v1037_v24, %v1036_v23  ;;  %v868_v38 = vld [vmem:[%s5386_s21 + $0x10] sm:$0xff]  ;;  %v869_v39 = vld [vmem:[%s5386_s21 + $0x18] sm:$0xff] }
  0x2f   : > { %v5445_v2 = vld [vmem:[%s5901_s27] sm:$0xff]  ;;  %v5461_v13 = vld [vmem:[%s5901_s27 + $0x8] sm:$0xff]  ;;  %4935 = vmatpush3.bf16.msra.mxu1 %v4932_v14  ;;  %v773_v34 = vrot.slane %v5454_v10, %v772_v33  ;;  %v777_v37 = vrot.slane %v5474_v26, %v772_v33  ;;  %v4944_v44 = vpack.c.bf16 %v869_v39, %v868_v38  ;;  %v4309_v20 = vld [vmem:[%s5391_s15 + $0x38] sm:$0xff] }
  0x30   : > { %762 = vperm.xlu0 %5162, %v5445_v2   ;;  %4937 = vmatprep.subr.bf16.mxu1 %v4936_v19  ;;  %v1030_v28 = vld [vmem:[%s5902_s29] sm:$0xff]  ;;  %v1031_v29 = vld [vmem:[%s5902_s29 + $0x8] sm:$0xff]  ;;  %v1032_v40 = vld [vmem:[%s5902_s29 + $0x10] sm:$0xff]  ;;  %vm1346_vm6 = vcmp.gt.f32.partialorder %v5461_v13, 0.0  ;;  %vm1345_vm7 = vcmp.gt.f32.partialorder %v5445_v2, 0.0 }
  0x31   : > { %4931 = vmatpush3.bf16.msra.mxu0 %v4928_v9  ;;  %v4956_v30 = vpack.c.bf16 %v1031_v29, %v1030_v28  ;;  %v1033_v41 = vld [vmem:[%s5902_s29 + $0x18] sm:$0xff]  ;;  %v1370_v61 = vsel %vm1346_vm6, 1, %v5260_v4  ;;  %v1369_v11 = vsel %vm1345_vm7, 1, %v5260_v4  ;;  %v4306_v12 = vld [vmem:[%s5391_s15 + $0x20] sm:$0xff]  ;;  %v4297_v16 = vld [vmem:[%s5381_s30 + $0x28] sm:$0xff]  ;;  %vm3903_vm7 = vcmask 523264  }
  0x32   : > { %4949 = vmatprep.subr.bf16.mxu0 %v4948_v22  ;;  %v4960_v45 = vpack.c.bf16 %v1033_v41, %v1032_v40  ;;  %v4296_v15 = vld [vmem:[%s5381_s30 + $0x20] sm:$0xff]  ;;  %v4308_v4 = vld [vmem:[%s5391_s15 + $0x30] sm:$0xff]  ;;  %v4299_v28 = vld [vmem:[%s5381_s30 + $0x38] sm:$0xff]  ;;  %s5904_s17 = scalar_lea.vmem %s5903_s7, %s5371_s23 }
  0x33   : > { %4939 = vmatpush3.bf16.msra.mxu1 %v4936_v19  ;;  %v4964_v17 = vpack.c.bf16 %v4297_v16, %v4296_v15  ;;  %v4976_v23 = vpack.c.bf16 %v4309_v20, %v4308_v4  ;;  %v4298_v24 = vld [vmem:[%s5381_s30 + $0x30] sm:$0xff]  ;;  %v4302_v29 = vld [vmem:[%s5386_s21 + $0x20] sm:$0xff]  ;;  %v4305_v39 = vld [vmem:[%s5386_s21 + $0x38] sm:$0xff] }
  0x34   : > { %767 = vperm.xlu0 %5162, %v5461_v13   ;;  %4603 = vmatmul.mubr.msk.f32.vlgmr.msra.gmra.mrb[0].mxu0 %vm784_vm1, %v5474_v26  ;;  %v4307_v13 = vld [vmem:[%s5391_s15 + $0x28] sm:$0xff]  ;;  %v4968_v33 = vpack.c.bf16 %v4299_v28, %v4298_v24  ;;  %v4318_v40 = vld [vmem:[%s5401_s28 + $0x20] sm:$0xff] }
  0x35   : > { %4941 = vmatprep.subr.bf16.mxu1 %v4940_v25  ;;  %4951 = vmatpush3.bf16.msra.mxu0 %v4948_v22  ;;  %v4972_v14 = vpack.c.bf16 %v4307_v13, %v4306_v12  ;;  %v4319_v41 = vld [vmem:[%s5401_s28 + $0x28] sm:$0xff] }
  0x36   : > { %4953 = vmatprep.subr.bf16.mxu0 %v4952_v27  ;;  %v4333_v28 = vld [vmem:[%s5381_s30 + $0x48] sm:$0xff] }
  0x39   : > { %4955 = vmatpush3.bf16.msra.mxu0 %v4952_v27 }
  0x3a   : > { %4957 = vmatprep.subr.bf16.mxu0 %v4956_v30 }
  0xaf   : > { %v5481_v35 = vpop.permute.xlu0 %762 }
  0xb0   : > { %v5484_v36 = vmul.f32 %v773_v34, %v5481_v35 }
  0xb2   : > { %4613 = vmatprep.mubr.msk.f32.mxu1 %vm784_vm1, %v5484_v36  ;;  %4635 = vmatprep.mubr.msk.f32.mxu0 %vm784_vm1, %v5484_v36 }
  0xb3   : > { %v5495_v42 = vpop.permute.xlu0 %767 }
  0xb4   : > { %v5498_v43 = vmul.f32 %v777_v37, %v5495_v42  ;;  %v4304_v37 = vld [vmem:[%s5386_s21 + $0x30] sm:$0xff] }
  0xb6   : > { %4614 = vmatmul.mubr.msk.f32.vlgmr.msra.gmra.mrb[0].mxu1 %vm784_vm1, %v5498_v43  ;;  %4636 = vmatmul.mubr.msk.f32.vlgmr.msra.gmra.mrb[2].mxu0 %vm784_vm1, %v5498_v43 }
  0xb7   : > { %4943 = vmatpush3.bf16.msra.mxu1 %v4940_v25  ;;  %4959 = vmatpush3.bf16.msra.mxu0 %v4956_v30  ;;  %v4303_v30 = vld [vmem:[%s5386_s21 + $0x28] sm:$0xff] }
  0xb8   : > { %4945 = vmatprep.subr.bf16.mxu1 %v4944_v44  ;;  %4961 = vmatprep.subr.bf16.mxu0 %v4960_v45  ;;  %v4980_v34 = vpack.c.bf16 %v4303_v30, %v4302_v29 }
  0xb9   : > { %4624 = vmatprep.mubr.msk.f32.mxu1 %vm784_vm1, %v5454_v10  ;;  %4646 = vmatprep.mubr.msk.f32.mxu0 %vm784_vm1, %v5454_v10 }
  0xbb   : > { %4947 = vmatpush3.bf16.msra.mxu1 %v4944_v44  ;;  %4963 = vmatpush3.bf16.msra.mxu0 %v4960_v45  ;;  %v4984_v44 = vpack.c.bf16 %v4305_v39, %v4304_v37  ;;  %v4988_v45 = vpack.c.bf16 %v4319_v41, %v4318_v40  ;;  %v4334_v39 = vld [vmem:[%s5381_s30 + $0x50] sm:$0xff]  ;;  %v4335_v41 = vld [vmem:[%s5381_s30 + $0x58] sm:$0xff] }
  0xbc   : > { %4654 = vmatprep.subr.mxu1 %v5261_v48  ;;  %4649 = vmatprep.subr.mxu0 %v5261_v48 }
  0xbe   : > { %4625 = vmatmul.mubr.msk.f32.vlgmr.msra.gmra.mrb[0].mxu1 %vm784_vm1, %v5474_v26  ;;  %4647 = vmatmul.mubr.msk.f32.vlgmr.msra.gmra.mrb[2].mxu0 %vm784_vm1, %v5474_v26 }
  0xbf   : > { %4656 = vmatprep.mubr.msk.f32.mxu1 %vm5262_vm2, %v5261_v48  ;;  %4651 = vmatprep.mubr.msk.f32.mxu0 %vm5262_vm2, %v5261_v48 }
 0x107   : > { %v4604_v46 = vpop.f32.mrb[0].mxu0 }
 0x108   : > { %v857_v47 = vpop.f32.mrb[1].mxu0 }
 0x191   : > { %v4626_v49 = vpop.f32.mrb[0].mxu1  ;;  %v4648_v50 = vpop.f32.mrb[2].mxu0 }
 0x192   : > { %v1021_v51 = vpop.f32.mrb[1].mxu1  ;;  %v1179_v52 = vpop.f32.mrb[3].mxu0  ;;  %4655 = vmatpush3.xpose.msk.msra.mxu1 %vm1188_vm3, %v4626_v49 }
 0x193   : > { %4650 = vmatpush3.xpose.msk.msra.mxu0 %vm1188_vm3, %v1021_v51  ;;  %4664 = vmatprep.subr.mxu1 %v5261_v48  ;;  %v4315_v51 = vld [vmem:[%s5902_s29 + $0x28] sm:$0xff] }
 0x194   : > { %4659 = vmatprep.subr.mxu0 %v5261_v48 }
 0x195   : > { %4657 = vmatmul.mubr.msk.f32.vlgmr.msra.gmra.mrb[2].mxu1 %vm1188_vm3, %v4604_v46  ;;  %v4320_v46 = vld [vmem:[%s5401_s28 + $0x30] sm:$0xff] }
 0x196   : > { %4652 = vmatmul.mubr.msk.f32.vlgmr.msra.gmra.mrb[4].mxu0 %vm1188_vm3, %v857_v47  ;;  %4665 = vmatpush3.msra.mxu1 %v4648_v50  ;;  %v4321_v47 = vld [vmem:[%s5401_s28 + $0x38] sm:$0xff]  ;;  %v4314_v50 = vld [vmem:[%s5902_s29 + $0x20] sm:$0xff] }
 0x197   : > { %4660 = vmatpush3.msra.mxu0 %v1179_v52  ;;  %4666 = vmatprep.mubr.msk.f32.mxu1 %vm5262_vm2, %v5261_v48  ;;  %v4992_v49 = vpack.c.bf16 %v4321_v47, %v4320_v46  ;;  %v4996_v52 = vpack.c.bf16 %v4315_v51, %v4314_v50  ;;  %v4340_v51 = vld [vmem:[%s5386_s21 + $0x50] sm:$0xff] }
 0x198   : > { %4661 = vmatprep.mubr.msk.f32.mxu0 %vm5262_vm2, %v5261_v48  ;;  %4973 = vmatprep.subr.bf16.mxu1 %v4972_v14 }
 0x199   : > { %4965 = vmatprep.subr.bf16.mxu0 %v4964_v17 }
 0x268   : > { %v1337_v53 = vpop.f32.mrb[2].mxu1 }
 0x269   : > { %v5528_v54 = vpop.f32.mrb[4].mxu0  ;;  %v4658_v55 = vpop.f32.mrb[3].mxu1  ;;  %vm1342_vm4 = vcmp.eq.f32.partialorder %v1337_v53, 0.0 }
 0x26a   : > { %v4653_v56 = vpop.f32.mrb[5].mxu0  ;;  %v1344_v57 = vsel %vm1342_vm4, -1e+20, %v1337_v53  ;;  %vm1341_vm5 = vcmp.eq.f32.partialorder %v5528_v54, 0.0 }
 0x26b   : > { %v1350_v58 = vsel %vm1188_vm3, %v1344_v57, -inf  ;;  %v1343_v59 = vsel %vm1341_vm5, -1e+20, %v5528_v54 }
 0x26c   : > { %1351 = vmax.xlane.f32.xlu1 %v1350_v58  ;;  %v1347_v60 = vsel %vm1188_vm3, %v1343_v59, -inf }
 0x270   : > { %1348 = vmax.xlane.f32.xlu1 %v1347_v60 }
 0x281   : > { %1375 = vperm.xlu1 %5163, %v1370_v61  }
 0x2f9   : > { %v1352_v62 = vpop.xlane.xlu1 %1351 }
 0x2fa   : > { %v1354_v63 = vsub.f32 %v1344_v57, %v1352_v62 }
 0x2fc   : > { %v1357_v0 = vmul.f32 1.442695, %v1354_v63 }
 0x2fd   : > { %v1349_v1 = vpop.xlane.xlu1 %1348 }
 0x2fe   : > { %5164 = vpow2.f32 %v1357_v0  ;;  %v1353_v3 = vsub.f32 %v1343_v59, %v1349_v1 }
 0x300   : > { %v1355_v5 = vmul.f32 1.442695, %v1353_v3 }
 0x301   : > { %v5544_v18 = vpop.permute.xlu1 %1375 }
 0x302   : > { %5166 = vpow2.f32 %v1355_v5  ;;  %vm1378_vm8 = vcmp.eq.s32.totalorder %v5544_v18, 1 }
 0x308   : > { %v5165_v6 = vpop.eup %5164 }
 0x309   : > { %v1362_v7 = vsel %vm1188_vm3, %v5165_v6, 0.0 }
 0x30a   : > { %1363 = vadd.xlane.f32.xlu0 %v1362_v7 }
 0x30c   : > { %v5167_v8 = vpop.eup %5166 }
 0x30d   : > { %v1359_v9 = vsel %vm1188_vm3, %v5167_v8, 0.0 }
 0x30e   : > { %1360 = vadd.xlane.f32.xlu1 %v1359_v9 }
 0x31f   : > { %1372 = vperm.xlu1 %5163, %v1369_v11  }
 0x397   : > { %v1364_v2 = vpop.xlane.xlu0 %1363 }
 0x398   : > { %5168 = vrcp.f32 %v1364_v2 }
 0x39b   : > { %v1361_v19 = vpop.xlane.xlu1 %1360 }
 0x39c   : > { %5170 = vrcp.f32 %v1361_v19 }
 0x39f   : > { %v5550_v25 = vpop.permute.xlu1 %1372 }
 0x3a0   : > { %vm1377_vm9 = vcmp.eq.s32.totalorder %v5550_v25, 1 }
 0x3a2   : > { %v5169_v21 = vpop.eup %5168 }
 0x3a3   : > { %v1368_v22 = vmul.f32 %v5169_v21, %v5165_v6 }
 0x3a5   : > { %v1380_v27 = vsel %vm1378_vm8, %v1368_v22, %v1337_v53  ;;  %v4316_v53 = vld [vmem:[%s5902_s29 + $0x30] sm:$0xff]  ;;  %v4342_v22 = vld [vmem:[%s5391_s15 + $0x40] sm:$0xff] }
 0x3a6   : > { %v5171_v31 = vpop.eup %5170  ;;  %4667 = vmatmul.mubr.msk.f32.vlgmr.msra.gmra.mrb[4].mxu1 %vm1188_vm3, %v1380_v27  ;;  %v4332_v27 = vld [vmem:[%s5381_s30 + $0x40] sm:$0xff] }
 0x3a7   : > { %v1367_v32 = vmul.f32 %v5171_v31, %v5167_v8  ;;  %4975 = vmatpush3.bf16.msra.mxu1 %v4972_v14  ;;  %4688 = vmatprep.mubr.msk.f32.mxu1 %vm784_vm1, %v5484_v36  ;;  %v5004_v29 = vpack.c.bf16 %v4333_v28, %v4332_v27 }
 0x3a8   : > { %4977 = vmatprep.subr.bf16.mxu1 %v4976_v23 }
 0x3a9   : > { %v1379_v38 = vsel %vm1377_vm9, %v1367_v32, %v5528_v54  ;;  %v4317_v54 = vld [vmem:[%s5902_s29 + $0x38] sm:$0xff]  ;;  %v4344_v32 = vld [vmem:[%s5391_s15 + $0x50] sm:$0xff] }
 0x3aa   : > { %4662 = vmatmul.mubr.msk.f32.vlgmr.msra.gmra.mrb[6].mxu0 %vm1188_vm3, %v1379_v38  ;;  %v5000_v55 = vpack.c.bf16 %v4317_v54, %v4316_v53  ;;  %v4341_v53 = vld [vmem:[%s5386_s21 + $0x58] sm:$0xff]  ;;  %v4354_v54 = vld [vmem:[%s5401_s28 + $0x40] sm:$0xff] }
 0x3ab   : > { %4967 = vmatpush3.bf16.msra.mxu0 %v4964_v17  ;;  %4979 = vmatpush3.bf16.msra.mxu1 %v4976_v23  ;;  %v4343_v23 = vld [vmem:[%s5391_s15 + $0x48] sm:$0xff] }
 0x3ac   : > { %4969 = vmatprep.subr.bf16.mxu0 %v4968_v33  ;;  %4981 = vmatprep.subr.bf16.mxu1 %v4980_v34  ;;  %v5012_v24 = vpack.c.bf16 %v4343_v23, %v4342_v22 }
 0x3ad   : > { %4677 = vmatprep.mubr.msk.f32.mxu0 %vm784_vm1, %v5454_v10 }
 0x3ae   : > { %4689 = vmatmul.mubr.msk.f32.vlgmr.msra.gmra.mrb[6].mxu1 %vm784_vm1, %v5498_v43 }
 0x3af   : > { %4971 = vmatpush3.bf16.msra.mxu0 %v4968_v33  ;;  %4983 = vmatpush3.bf16.msra.mxu1 %v4980_v34  ;;  %v4345_v33 = vld [vmem:[%s5391_s15 + $0x58] sm:$0xff] }
 0x3b0   : > { %4985 = vmatprep.subr.bf16.mxu1 %v4984_v44  ;;  %4989 = vmatprep.subr.bf16.mxu0 %v4988_v45  ;;  %v5016_v38 = vpack.c.bf16 %v4345_v33, %v4344_v32 }
 0x3b1   : > { %4699 = vmatprep.mubr.msk.f32.mxu1 %vm784_vm1, %v5454_v10 }
 0x3b2   : > { %4678 = vmatmul.mubr.msk.f32.vlgmr.msra.gmra.mrb[8].mxu0 %vm784_vm1, %v5474_v26 }
 0x3b3   : > { %4987 = vmatpush3.bf16.msra.mxu1 %v4984_v44  ;;  %4991 = vmatpush3.bf16.msra.mxu0 %v4988_v45  ;;  %v4338_v44 = vld [vmem:[%s5386_s21 + $0x40] sm:$0xff]  ;;  %v4339_v45 = vld [vmem:[%s5386_s21 + $0x48] sm:$0xff] }
 0x3b4   : > { %4710 = vmatprep.mubr.msk.f32.mxu0 %vm784_vm1, %v5484_v36  ;;  %4993 = vmatprep.subr.bf16.mxu0 %v4992_v49  ;;  %v5020_v50 = vpack.c.bf16 %v4339_v45, %v4338_v44  ;;  %v4368_v44 = vld [vmem:[%s5381_s30 + $0x60] sm:$0xff]  ;;  %v4369_v45 = vld [vmem:[%s5381_s30 + $0x68] sm:$0xff] }
 0x3b5   : > { %4724 = vmatprep.subr.mxu1 %v5261_v48 }
 0x3b6   : > { %4700 = vmatmul.mubr.msk.f32.vlgmr.msra.gmra.mrb[6].mxu1 %vm784_vm1, %v5474_v26 }
 0x3b7   : > { %4995 = vmatpush3.bf16.msra.mxu0 %v4992_v49  ;;  %4726 = vmatprep.mubr.msk.f32.mxu1 %vm5262_vm2, %v5261_v48  ;;  %v5008_v49 = vpack.c.bf16 %v4335_v41, %v4334_v39  ;;  %v4378_v39 = vld [vmem:[%s5391_s15 + $0x60] sm:$0xff] }
 0x3b8   : > { %4997 = vmatprep.subr.bf16.mxu0 %v4996_v52 }
 0x3ba   : > { %4711 = vmatmul.mubr.msk.f32.vlgmr.msra.gmra.mrb[10].mxu0 %vm784_vm1, %v5498_v43 }
 0x3bb   : > { %4999 = vmatpush3.bf16.msra.mxu0 %v4996_v52  ;;  %4721 = vmatprep.mubr.msk.f32.mxu0 %vm784_vm1, %v5454_v10 }
 0x3bc   : > { %5001 = vmatprep.subr.bf16.mxu0 %v5000_v55 }
 0x3bf   : > { %5003 = vmatpush3.bf16.msra.mxu0 %v5000_v55  ;;  %v4355_v55 = vld [vmem:[%s5401_s28 + $0x48] sm:$0xff] }
 0x3c0   : > { %4734 = vmatprep.subr.mxu0 %v5261_v48 }
 0x3c2   : > { %4722 = vmatmul.mubr.msk.f32.vlgmr.msra.gmra.mrb[10].mxu0 %vm784_vm1, %v5474_v26 }
 0x3c3   : > { %4736 = vmatprep.mubr.msk.f32.mxu0 %vm5262_vm2, %v5261_v48 }
 0x479   : > { %v5599_v56 = vpop.f32.mrb[4].mxu1 }
 0x47a   : > { %v4668_v57 = vpop.f32.mrb[5].mxu1 }
 0x47b   : > { %v5024_v57 = vpack.c.bf16 %v4341_v53, %v4340_v51  ;;  %v4381_v51 = vld [vmem:[%s5391_s15 + $0x78] sm:$0xff] }
 0x47d   : > { %v5601_v58 = vpop.f32.mrb[6].mxu0 }
 0x47e   : > { %v4663_v59 = vpop.f32.mrb[7].mxu0 }
 0x47f   : > { %v5028_v59 = vpack.c.bf16 %v4355_v55, %v4354_v54  ;;  %v4370_v55 = vld [vmem:[%s5381_s30 + $0x70] sm:$0xff] }
 0x485   : > { %v4679_v60 = vpop.f32.mrb[8].mxu0 }
 0x486   : > { %v1598_v61 = vpop.f32.mrb[9].mxu0 }
 0x489   : > { %v4701_v62 = vpop.f32.mrb[6].mxu1 }
 0x48a   : > { %v1758_v63 = vpop.f32.mrb[7].mxu1 }
 0x48b   : > { %4725 = vmatpush3.xpose.msk.msra.mxu1 %vm1188_vm3, %v1758_v63  ;;  %v4350_v63 = vld [vmem:[%s5902_s29 + $0x40] sm:$0xff] }
 0x48c   : > { %4729 = vmatprep.subr.mxu1 %v5261_v48 }
 0x48e   : > { %4727 = vmatmul.mubr.msk.f32.vlgmr.msra.gmra.mrb[8].mxu1 %vm1188_vm3, %v1598_v61  ;;  %v4357_v61 = vld [vmem:[%s5401_s28 + $0x58] sm:$0xff] }
 0x48f   : > { %4730 = vmatpush3.xpose.msk.msra.mxu1 %vm1188_vm3, %v4701_v62  ;;  %4731 = vmatprep.mubr.msk.f32.mxu1 %vm5262_vm2, %v5261_v48 }
 0x490   : > { %4739 = vmatprep.subr.mxu1 %v5261_v48 }
 0x492   : > { %4732 = vmatmul.mubr.msk.f32.vlgmr.msra.gmra.mrb[10].mxu1 %vm1188_vm3, %v4679_v60  ;;  %v4356_v60 = vld [vmem:[%s5401_s28 + $0x50] sm:$0xff] }
 0x493   : > { %4741 = vmatprep.mubr.msk.f32.mxu1 %vm5262_vm2, %v5261_v48  ;;  %v5032_v62 = vpack.c.bf16 %v4357_v61, %v4356_v60  ;;  %v4374_v60 = vld [vmem:[%s5386_s21 + $0x60] sm:$0xff]  ;;  %v4375_v61 = vld [vmem:[%s5386_s21 + $0x68] sm:$0xff] }
 0x495   : > { %v4723_v0 = vpop.f32.mrb[10].mxu0 }
 0x496   : > { %v1918_v1 = vpop.f32.mrb[11].mxu0  ;;  %4740 = vmatpush3.msra.mxu1 %v4723_v0  ;;  %v4351_v0 = vld [vmem:[%s5902_s29 + $0x48] sm:$0xff] }
 0x497   : > { %4735 = vmatpush3.msra.mxu0 %v1918_v1  ;;  %5013 = vmatprep.subr.bf16.mxu1 %v5012_v24  ;;  %v5036_v1 = vpack.c.bf16 %v4351_v0, %v4350_v63 }
 0x498   : > { %5005 = vmatprep.subr.bf16.mxu0 %v5004_v29 }
 0x561   : > { %v1999_v3 = vpop.f32.mrb[8].mxu1 }
 0x562   : > { %v4728_v5 = vpop.f32.mrb[9].mxu1  ;;  %vm2079_vm10 = vcmp.eq.f32.partialorder %v1999_v3, 0.0 }
 0x563   : > { %v2081_v6 = vsel %vm2079_vm10, -1e+20, %v1999_v3  ;;  %v4353_v5 = vld [vmem:[%s5902_s29 + $0x58] sm:$0xff] }
 0x564   : > { %v2083_v7 = vsel %vm1188_vm3, %v2081_v6, -inf }
 0x565   : > { %2084 = vmax.xlane.f32.xlu0 %v2083_v7  ;;  %v2075_v8 = vpop.f32.mrb[10].mxu1 }
 0x566   : > { %v4733_v9 = vpop.f32.mrb[11].mxu1  ;;  %vm2080_vm11 = vcmp.eq.f32.partialorder %v2075_v8, 0.0 }
 0x567   : > { %v2082_v11 = vsel %vm2080_vm11, -1e+20, %v2075_v8 }
 0x568   : > { %v2086_v12 = vsel %vm1188_vm3, %v2082_v11, -inf }
 0x569   : > { %2087 = vmax.xlane.f32.xlu1 %v2086_v12 }
 0x5f2   : > { %v2085_v13 = vpop.xlane.xlu0 %2084 }
 0x5f3   : > { %v2089_v14 = vsub.f32 %v2081_v6, %v2085_v13 }
 0x5f5   : > { %v2091_v17 = vmul.f32 1.442695, %v2089_v14 }
 0x5f6   : > { %v2088_v15 = vpop.xlane.xlu1 %2087 }
 0x5f7   : > { %v2090_v16 = vsub.f32 %v2082_v11, %v2088_v15 }
 0x5f9   : > { %v2093_v2 = vmul.f32 1.442695, %v2090_v16 }
 0x5fb   : > { %5172 = vpow2.f32 %v2093_v2 }
 0x5fc   : > { %5174 = vpow2.f32 %v2091_v17 }
 0x605   : > { %v5173_v19 = vpop.eup %5172 }
 0x606   : > { %v2098_v4 = vsel %vm1188_vm3, %v5173_v19, 0.0  ;;  %v5175_v20 = vpop.eup %5174 }
 0x607   : > { %2099 = vadd.xlane.f32.xlu0 %v2098_v4  ;;  %v2095_v21 = vsel %vm1188_vm3, %v5175_v20, 0.0 }
 0x60b   : > { %2096 = vadd.xlane.f32.xlu0 %v2095_v21 }
 0x694   : > { %v2100_v30 = vpop.xlane.xlu0 %2099 }
 0x695   : > { %5176 = vrcp.f32 %v2100_v30 }
 0x698   : > { %v2097_v31 = vpop.xlane.xlu0 %2096 }
 0x699   : > { %5178 = vrcp.f32 %v2097_v31 }
 0x69f   : > { %v5177_v34 = vpop.eup %5176 }
 0x6a0   : > { %v2104_v37 = vmul.f32 %v5177_v34, %v5173_v19 }
 0x6a2   : > { %v2106_v40 = vsel %vm1378_vm8, %v2104_v37, %v2075_v8 }
 0x6a3   : > { %v5179_v46 = vpop.eup %5178  ;;  %4742 = vmatmul.mubr.msk.f32.vlgmr.msra.gmra.mrb[12].mxu1 %vm1188_vm3, %v2106_v40  ;;  %v4379_v40 = vld [vmem:[%s5391_s15 + $0x68] sm:$0xff] }
 0x6a4   : > { %5015 = vmatpush3.bf16.msra.mxu1 %v5012_v24  ;;  %4763 = vmatprep.mubr.msk.f32.mxu1 %vm784_vm1, %v5484_v36  ;;  %v2103_v47 = vmul.f32 %v5179_v46, %v5175_v20  ;;  %v5052_v41 = vpack.c.bf16 %v4379_v40, %v4378_v39  ;;  %v5044_v46 = vpack.c.bf16 %v4369_v45, %v4368_v44 }
 0x6a5   : > { %5017 = vmatprep.subr.bf16.mxu1 %v5016_v38 }
 0x6a6   : > { %v2105_v52 = vsel %vm1377_vm9, %v2103_v47, %v1999_v3  ;;  %v4352_v3 = vld [vmem:[%s5902_s29 + $0x50] sm:$0xff] }
 0x6a7   : > { %4737 = vmatmul.mubr.msk.f32.vlgmr.msra.gmra.mrb[12].mxu0 %vm1188_vm3, %v2105_v52  ;;  %v5040_v6 = vpack.c.bf16 %v4353_v5, %v4352_v3  ;;  %v4376_v3 = vld [vmem:[%s5386_s21 + $0x70] sm:$0xff] }
 0x6a8   : > { %5007 = vmatpush3.bf16.msra.mxu0 %v5004_v29  ;;  %5019 = vmatpush3.bf16.msra.mxu1 %v5016_v38 }
 0x6a9   : > { %5009 = vmatprep.subr.bf16.mxu0 %v5008_v49  ;;  %5021 = vmatprep.subr.bf16.mxu1 %v5020_v50 }
 0x6aa   : > { %4752 = vmatprep.mubr.msk.f32.mxu0 %vm784_vm1, %v5454_v10 }
 0x6ab   : > { %4764 = vmatmul.mubr.msk.f32.vlgmr.msra.gmra.mrb[14].mxu1 %vm784_vm1, %v5498_v43 }
 0x6ac   : > { %5011 = vmatpush3.bf16.msra.mxu0 %v5008_v49  ;;  %5023 = vmatpush3.bf16.msra.mxu1 %v5020_v50  ;;  %v4380_v50 = vld [vmem:[%s5391_s15 + $0x70] sm:$0xff]  ;;  %s5263_s15 = smov 8  }
 0x6ad   : > { %5025 = vmatprep.subr.bf16.mxu1 %v5024_v57  ;;  %5029 = vmatprep.subr.bf16.mxu0 %v5028_v59  ;;  %v5056_v54 = vpack.c.bf16 %v4381_v51, %v4380_v50 }
 0x6ae   : > { %4774 = vmatprep.mubr.msk.f32.mxu1 %vm784_vm1, %v5454_v10 }
 0x6af   : > { %4753 = vmatmul.mubr.msk.f32.vlgmr.msra.gmra.mrb[14].mxu0 %vm784_vm1, %v5474_v26 }
 0x6b0   : > { %5027 = vmatpush3.bf16.msra.mxu1 %v5024_v57  ;;  %5031 = vmatpush3.bf16.msra.mxu0 %v5028_v59  ;;  %v4371_v59 = vld [vmem:[%s5381_s30 + $0x78] sm:$0xff]  ;;  %s5265_s30 = smov 24  }
 0x6b1   : > { %4785 = vmatprep.mubr.msk.f32.mxu0 %vm784_vm1, %v5484_v36  ;;  %5033 = vmatprep.subr.bf16.mxu0 %v5032_v62  ;;  %v5048_v0 = vpack.c.bf16 %v4371_v59, %v4370_v55 }
 0x6b2   : > { %4799 = vmatprep.subr.mxu1 %v5261_v48 }
 0x6b3   : > { %4775 = vmatmul.mubr.msk.f32.vlgmr.msra.gmra.mrb[14].mxu1 %vm784_vm1, %v5474_v26 }
 0x6b4   : > { %5035 = vmatpush3.bf16.msra.mxu0 %v5032_v62  ;;  %4801 = vmatprep.mubr.msk.f32.mxu1 %vm5262_vm2, %v5261_v48 }
 0x6b5   : > { %5037 = vmatprep.subr.bf16.mxu0 %v5036_v1 }
 0x6b7   : > { %4786 = vmatmul.mubr.msk.f32.vlgmr.msra.gmra.mrb[16].mxu0 %vm784_vm1, %v5498_v43 }
 0x6b8   : > { %5039 = vmatpush3.bf16.msra.mxu0 %v5036_v1  ;;  %4796 = vmatprep.mubr.msk.f32.mxu0 %vm784_vm1, %v5454_v10  ;;  %v5060_v1 = vpack.c.bf16 %v4375_v61, %v4374_v60 }
 0x6b9   : > { %5041 = vmatprep.subr.bf16.mxu0 %v5040_v6 }
 0x6bc   : > { %5043 = vmatpush3.bf16.msra.mxu0 %v5040_v6  ;;  %v4377_v6 = vld [vmem:[%s5386_s21 + $0x78] sm:$0xff]  ;;  %s5264_s21 = smov 16  }
 0x6bd   : > { %4809 = vmatprep.subr.mxu0 %v5261_v48 }
 0x6bf   : > { %4797 = vmatmul.mubr.msk.f32.vlgmr.msra.gmra.mrb[16].mxu0 %vm784_vm1, %v5474_v26 }
 0x6c0   : > { %4811 = vmatprep.mubr.msk.f32.mxu0 %vm5262_vm2, %v5261_v48 }
 0x776   : > { %v5669_v7 = vpop.f32.mrb[12].mxu1 }
 0x777   : > { %v4743_v8 = vpop.f32.mrb[13].mxu1 }
 0x778   : > { %v4390_v8 = vld [vmem:[%s5401_s28 + $0x60] sm:$0xff] }
 0x77a   : > { %v5671_v9 = vpop.f32.mrb[12].mxu0 }
 0x77b   : > { %v4738_v11 = vpop.f32.mrb[13].mxu0 }
 0x77c   : > { %v4391_v11 = vld [vmem:[%s5401_s28 + $0x68] sm:$0xff] }
 0x782   : > { %v4754_v12 = vpop.f32.mrb[14].mxu0 }
 0x783   : > { %v2324_v13 = vpop.f32.mrb[15].mxu0 }
 0x786   : > { %v4776_v14 = vpop.f32.mrb[14].mxu1 }
 0x787   : > { %v2484_v15 = vpop.f32.mrb[15].mxu1 }
 0x788   : > { %4800 = vmatpush3.xpose.msk.msra.mxu1 %vm1188_vm3, %v2484_v15  ;;  %v4393_v15 = vld [vmem:[%s5401_s28 + $0x78] sm:$0xff] }
 0x789   : > { %4804 = vmatprep.subr.mxu1 %v5261_v48 }
 0x78b   : > { %4802 = vmatmul.mubr.msk.f32.vlgmr.msra.gmra.mrb[16].mxu1 %vm1188_vm3, %v2324_v13  ;;  %v5068_v13 = vpack.c.bf16 %v4391_v11, %v4390_v8 }
 0x78c   : > { %4805 = vmatpush3.xpose.msk.msra.mxu1 %vm1188_vm3, %v4776_v14  ;;  %4806 = vmatprep.mubr.msk.f32.mxu1 %vm5262_vm2, %v5261_v48  ;;  %v4392_v14 = vld [vmem:[%s5401_s28 + $0x70] sm:$0xff] }
 0x78d   : > { %4814 = vmatprep.subr.mxu1 %v5261_v48 }
 0x78f   : > { %4807 = vmatmul.mubr.msk.f32.vlgmr.msra.gmra.mrb[18].mxu1 %vm1188_vm3, %v4754_v12  ;;  %v5064_v12 = vpack.c.bf16 %v4377_v6, %v4376_v3 }
 0x790   : > { %4816 = vmatprep.mubr.msk.f32.mxu1 %vm5262_vm2, %v5261_v48 }
 0x792   : > { %v4798_v16 = vpop.f32.mrb[16].mxu0 }
 0x793   : > { %v2644_v17 = vpop.f32.mrb[17].mxu0  ;;  %4815 = vmatpush3.msra.mxu1 %v4798_v16  ;;  %v5072_v16 = vpack.c.bf16 %v4393_v15, %v4392_v14 }
 0x794   : > { %4810 = vmatpush3.msra.mxu0 %v2644_v17  ;;  %5053 = vmatprep.subr.bf16.mxu1 %v5052_v41  ;;  %v4386_v17 = vld [vmem:[%s5902_s29 + $0x60] sm:$0xff] }
 0x795   : > { %5045 = vmatprep.subr.bf16.mxu0 %v5044_v46 }
 0x85e   : > { %v2725_v2 = vpop.f32.mrb[16].mxu1 }
 0x85f   : > { %v4803_v19 = vpop.f32.mrb[17].mxu1  ;;  %vm2805_vm13 = vcmp.eq.f32.partialorder %v2725_v2, 0.0 }
 0x860   : > { %v2807_v23 = vsel %vm2805_vm13, -1e+20, %v2725_v2 }
 0x861   : > { %v2809_v24 = vsel %vm1188_vm3, %v2807_v23, -inf }
 0x862   : > { %v2801_v4 = vpop.f32.mrb[18].mxu1 }
 0x863   : > { %v4808_v20 = vpop.f32.mrb[19].mxu1  ;;  %vm2806_vm12 = vcmp.eq.f32.partialorder %v2801_v4, 0.0 }
 0x864   : > { %v2808_v21 = vsel %vm2806_vm12, -1e+20, %v2801_v4  ;;  %v4389_v20 = vld [vmem:[%s5902_s29 + $0x78] sm:$0xff] }
 0x865   : > { %v2812_v22 = vsel %vm1188_vm3, %v2808_v21, -inf }
 0x866   : > { %2813 = vmax.xlane.f32.xlu0 %v2812_v22 }
 0x86a   : > { %2810 = vmax.xlane.f32.xlu0 %v2809_v24 }
 0x8f3   : > { %v2814_v27 = vpop.xlane.xlu0 %2813 }
 0x8f4   : > { %v2816_v28 = vsub.f32 %v2808_v21, %v2814_v27 }
 0x8f6   : > { %v2819_v29 = vmul.f32 1.442695, %v2816_v28 }
 0x8f7   : > { %v2811_v30 = vpop.xlane.xlu0 %2810 }
 0x8f8   : > { %5180 = vpow2.f32 %v2819_v29  ;;  %v2815_v31 = vsub.f32 %v2807_v23, %v2811_v30 }
 0x8fa   : > { %v2817_v32 = vmul.f32 1.442695, %v2815_v31 }
 0x8fc   : > { %5182 = vpow2.f32 %v2817_v32 }
 0x902   : > { %v5181_v33 = vpop.eup %5180 }
 0x903   : > { %v2824_v34 = vsel %vm1188_vm3, %v5181_v33, 0.0 }
 0x904   : > { %2825 = vadd.xlane.f32.xlu0 %v2824_v34 }
 0x906   : > { %v5183_v37 = vpop.eup %5182 }
 0x907   : > { %v2821_v38 = vsel %vm1188_vm3, %v5183_v37, 0.0 }
 0x908   : > { %2822 = vadd.xlane.f32.xlu0 %v2821_v38 }
 0x991   : > { %v2826_v47 = vpop.xlane.xlu0 %2825 }
 0x992   : > { %5184 = vrcp.f32 %v2826_v47 }
 0x995   : > { %v2823_v49 = vpop.xlane.xlu0 %2822 }
 0x996   : > { %5186 = vrcp.f32 %v2823_v49 }
 0x99c   : > { %v5185_v52 = vpop.eup %5184 }
 0x99d   : > { %v2830_v53 = vmul.f32 %v5185_v52, %v5181_v33 }
 0x99f   : > { %v2832_v57 = vsel %vm1378_vm8, %v2830_v53, %v2801_v4  ;;  %v4388_v4 = vld [vmem:[%s5902_s29 + $0x70] sm:$0xff] }
 0x9a0   : > { %v5187_v62 = vpop.eup %5186  ;;  %4817 = vmatmul.mubr.msk.f32.vlgmr.msra.gmra.mrb[20].mxu1 %vm1188_vm3, %v2832_v57  ;;  %v5080_v21 = vpack.c.bf16 %v4389_v20, %v4388_v4  ;;  %v5205_v20 = vld [vmem:[#allocation2 + $0x8] sm:$0xff] }
 0x9a1   : > { %5055 = vmatpush3.bf16.msra.mxu1 %v5052_v41  ;;  %4838 = vmatprep.mubr.msk.f32.mxu1 %vm784_vm1, %v5484_v36  ;;  %v2829_v63 = vmul.f32 %v5187_v62, %v5183_v37 }
 0x9a2   : > { %5057 = vmatprep.subr.bf16.mxu1 %v5056_v54 }
 0x9a3   : > { %v2831_v5 = vsel %vm1377_vm9, %v2829_v63, %v2725_v2  ;;  %v4387_v2 = vld [vmem:[%s5902_s29 + $0x68] sm:$0xff] }
 0x9a4   : > { %4812 = vmatmul.mubr.msk.f32.vlgmr.msra.gmra.mrb[18].mxu0 %vm1188_vm3, %v2831_v5  ;;  %v5076_v19 = vpack.c.bf16 %v4387_v2, %v4386_v17  ;;  %v5204_v17 = vld [vmem:[#allocation2] sm:$0xff] }
 0x9a5   : > { %5047 = vmatpush3.bf16.msra.mxu0 %v5044_v46  ;;  %5059 = vmatpush3.bf16.msra.mxu1 %v5056_v54 }
 0x9a6   : > { %5049 = vmatprep.subr.bf16.mxu0 %v5048_v0  ;;  %5061 = vmatprep.subr.bf16.mxu1 %v5060_v1 }
 0x9a7   : > { %4827 = vmatprep.mubr.msk.f32.mxu0 %vm784_vm1, %v5454_v10 }
 0x9a8   : > { %4839 = vmatmul.mubr.msk.f32.vlgmr.msra.gmra.mrb[22].mxu1 %vm784_vm1, %v5498_v43 }
 0x9a9   : > { %5051 = vmatpush3.bf16.msra.mxu0 %v5048_v0  ;;  %5063 = vmatpush3.bf16.msra.mxu1 %v5060_v1 }
 0x9aa   : > { %5065 = vmatprep.subr.bf16.mxu1 %v5064_v12  ;;  %5069 = vmatprep.subr.bf16.mxu0 %v5068_v13 }
 0x9ab   : > { %4849 = vmatprep.mubr.msk.f32.mxu1 %vm784_vm1, %v5454_v10 }
 0x9ac   : > { %4828 = vmatmul.mubr.msk.f32.vlgmr.msra.gmra.mrb[20].mxu0 %vm784_vm1, %v5474_v26 }
 0x9ad   : > { %5067 = vmatpush3.bf16.msra.mxu1 %v5064_v12  ;;  %5071 = vmatpush3.bf16.msra.mxu0 %v5068_v13 }
 0x9ae   : > { %4860 = vmatprep.mubr.msk.f32.mxu0 %vm784_vm1, %v5484_v36  ;;  %5073 = vmatprep.subr.bf16.mxu0 %v5072_v16 }
 0x9af   : > { %4874 = vmatprep.subr.mxu1 %v5261_v48 }
 0x9b0   : > { %4850 = vmatmul.mubr.msk.f32.vlgmr.msra.gmra.mrb[22].mxu1 %vm784_vm1, %v5474_v26 }
 0x9b1   : > { %5075 = vmatpush3.bf16.msra.mxu0 %v5072_v16  ;;  %4876 = vmatprep.mubr.msk.f32.mxu1 %vm5262_vm2, %v5261_v48 }
 0x9b2   : > { %5077 = vmatprep.subr.bf16.mxu0 %v5076_v19 }
 0x9b4   : > { %4861 = vmatmul.mubr.msk.f32.vlgmr.msra.gmra.mrb[22].mxu0 %vm784_vm1, %v5498_v43 }
 0x9b5   : > { %5079 = vmatpush3.bf16.msra.mxu0 %v5076_v19  ;;  %4871 = vmatprep.mubr.msk.f32.mxu0 %vm784_vm1, %v5454_v10 }
 0x9b6   : > { %5081 = vmatprep.subr.bf16.mxu0 %v5080_v21 }
 0x9b9   : > { %5083 = vmatpush3.bf16.msra.mxu0 %v5080_v21 }
 0x9ba   : > { %4884 = vmatprep.subr.mxu0 %v5261_v48 }
 0x9bc   : > { %4872 = vmatmul.mubr.msk.f32.vlgmr.msra.gmra.mrb[22].mxu0 %vm784_vm1, %v5474_v26 }
 0x9bd   : > { %4886 = vmatprep.mubr.msk.f32.mxu0 %vm5262_vm2, %v5261_v48 }
 0xa73   : > { %v2975_v36 = vpop.f32.mrb[20].mxu1 }
 0xa74   : > { %v4818_v22 = vpop.f32.mrb[21].mxu1 }
 0xa77   : > { %v2902_v23 = vpop.f32.mrb[18].mxu0 }
 0xa78   : > { %v4813_v24 = vpop.f32.mrb[19].mxu0 }
 0xa7f   : > { %v4829_v27 = vpop.f32.mrb[20].mxu0 }
 0xa80   : > { %v3050_v43 = vpop.f32.mrb[21].mxu0 }
 0xa83   : > { %v4851_v28 = vpop.f32.mrb[22].mxu1 }
 0xa84   : > { %v3210_v29 = vpop.f32.mrb[23].mxu1 }
 0xa85   : > { %4875 = vmatpush3.xpose.msk.msra.mxu1 %vm1188_vm3, %v3210_v29 }
 0xa86   : > { %4879 = vmatprep.subr.mxu1 %v5261_v48 }
 0xa88   : > { %4877 = vmatmul.mubr.msk.f32.vlgmr.msra.gmra.mrb[24].mxu1 %vm1188_vm3, %v3050_v43 }
 0xa89   : > { %4880 = vmatpush3.xpose.msk.msra.mxu1 %vm1188_vm3, %v4851_v28  ;;  %4881 = vmatprep.mubr.msk.f32.mxu1 %vm5262_vm2, %v5261_v48 }
 0xa8a   : > { %4889 = vmatprep.subr.mxu1 %v5261_v48 }
 0xa8c   : > { %4882 = vmatmul.mubr.msk.f32.vlgmr.msra.gmra.mrb[26].mxu1 %vm1188_vm3, %v4829_v27 }
 0xa8d   : > { %4891 = vmatprep.mubr.msk.f32.mxu1 %vm5262_vm2, %v5261_v48  ;;  %vm3731_vm2 = vcmask 130048  }
 0xa8f   : > { %v4873_v10 = vpop.f32.mrb[22].mxu0 }
 0xa90   : > { %v3370_v26 = vpop.f32.mrb[23].mxu0  ;;  %4890 = vmatpush3.msra.mxu1 %v4873_v10 }
 0xa91   : > { %4885 = vmatpush3.msra.mxu0 %v3370_v26 }
 0xb5b   : > { %v3451_v30 = vpop.f32.mrb[24].mxu1 }
 0xb5c   : > { %v4878_v31 = vpop.f32.mrb[25].mxu1  ;;  %vm3531_vm14 = vcmp.eq.f32.partialorder %v3451_v30, 0.0 }
 0xb5d   : > { %v3533_v32 = vsel %vm3531_vm14, -1e+20, %v3451_v30  ;;  %v3791_v31 = vld [vmem:[%s5415_s1 + $0x8] sm:$0xff] }
 0xb5e   : > { %v3535_v33 = vsel %vm1188_vm3, %v3533_v32, -inf }
 0xb5f   : > { %3536 = vmax.xlane.f32.xlu0 %v3535_v33  ;;  %v3527_v34 = vpop.f32.mrb[26].mxu1  ;;  %v3792_v33 = vld [vmem:[%s5415_s1 + $0x10] sm:$0xff] }
 0xb60   : > { %v4883_v37 = vpop.f32.mrb[27].mxu1  ;;  %vm3532_vm15 = vcmp.eq.f32.partialorder %v3527_v34, 0.0 }
 0xb61   : > { %v3534_v38 = vsel %vm3532_vm15, -1e+20, %v3527_v34 }
 0xb62   : > { %v3538_v39 = vsel %vm1188_vm3, %v3534_v38, -inf }
 0xb63   : > { %3539 = vmax.xlane.f32.xlu1 %v3538_v39  ;;  %v3889_v39 = vld [vmem:[%s5421_s24 + $0x8] sm:$0xff] }
 0xbec   : > { %v3537_v40 = vpop.xlane.xlu0 %3536 }
 0xbed   : > { %v3541_v48 = vsub.f32 %v3533_v32, %v3537_v40  ;;  %v3890_v40 = vld [vmem:[%s5421_s24 + $0x10] sm:$0xff] }
 0xbef   : > { %v3543_v41 = vmul.f32 1.442695, %v3541_v48 }
 0xbf0   : > { %v3540_v44 = vpop.xlane.xlu1 %3539 }
 0xbf1   : > { %5188 = vpow2.f32 %v3543_v41  ;;  %v3542_v45 = vsub.f32 %v3534_v38, %v3540_v44  ;;  %v3888_v38 = vld [vmem:[%s5421_s24] sm:$0xff]  ;;  %v3891_v41 = vld [vmem:[%s5421_s24 + $0x18] sm:$0xff] }
 0xbf2   : > { %v5092_v48 = vpack.c.bf16 %v3889_v39, %v3888_v38  ;;  %v5096_v44 = vpack.c.bf16 %v3891_v41, %v3890_v40  ;;  %v4412_v39 = vld [vmem:[%s742_s3] ss:$0 sm:$0xff] }
 0xbf3   : > { %v3545_v46 = vmul.f32 1.442695, %v3542_v45  ;;  %v4413_v41 = vld [vmem:[%s745_s4] ss:$0 sm:$0xff] }
 0xbf4   : > { %5093 = vmatprep.subr.bf16.mxu1 %v5092_v48 }
 0xbf5   : > { %5190 = vpow2.f32 %v3545_v46 }
 0xbfb   : > { %v5189_v47 = vpop.eup %5188 }
 0xbfc   : > { %v3547_v49 = vsel %vm1188_vm3, %v5189_v47, 0.0 }
 0xbfd   : > { %3548 = vadd.xlane.f32.xlu0 %v3547_v49 }
 0xbff   : > { %v5191_v50 = vpop.eup %5190 }
 0xc00   : > { %v3550_v51 = vsel %vm1188_vm3, %v5191_v50, 0.0 }
 0xc01   : > { %3551 = vadd.xlane.f32.xlu1 %v3550_v51 }
 0xc12   : > { %3709 = vrot.lane.b32.xlu1 %v5669_v7, %s5263_s15 }
 0xc13   : > { %3707 = vrot.lane.b32.xlu0 %v5671_v9, %s5263_s15 }
 0xc16   : > { %3715 = vrot.lane.b32.xlu1 %v2902_v23, %s5264_s21 }
 0xc17   : > { %3717 = vrot.lane.b32.xlu0 %v2975_v36, %s5264_s21 }
 0xc8a   : > { %v3549_v52 = vpop.xlane.xlu0 %3548 }
 0xc8b   : > { %5192 = vrcp.f32 %v3549_v52 }
 0xc8e   : > { %v3552_v53 = vpop.xlane.xlu1 %3551  ;;  %v3708_v1 = vpop.permute.xlu0 %3707 }
 0xc8f   : > { %5194 = vrcp.f32 %v3552_v53  ;;  %v3729_v3 = vsel %vm1188_vm3, %v5601_v58, %v3708_v1  ;;  %v4404_v53 = vld [vmem:[%s5904_s17] ss:$0 sm:$0xff]  ;;  %v3894_v1 = vld [vmem:[%s5421_s24 + $0x30] sm:$0xff] }
 0xc92   : > { %v3710_v0 = vpop.permute.xlu1 %3709  ;;  %v3718_v5 = vpop.permute.xlu0 %3717 }
 0xc93   : > { %v3730_v8 = vsel %vm1188_vm3, %v5599_v56, %v3710_v0 }
 0xc94   : > { %v3733_v13 = vsel %vm3731_vm2, %v3730_v8, %v3718_v5  ;;  %v4406_v5 = vld [vmem:[%s5906_s19] ss:$0 sm:$0xff] }
 0xc95   : > { %v5193_v54 = vpop.eup %5192 }
 0xc96   : > { %v3555_v55 = vmul.f32 %v5193_v54, %v5189_v47  ;;  %v3716_v25 = vpop.permute.xlu1 %3715 }
 0xc97   : > { %v3732_v18 = vsel %vm3731_vm2, %v3729_v3, %v3716_v25  ;;  %v3895_v25 = vld [vmem:[%s5421_s24 + $0x38] sm:$0xff] }
 0xc98   : > { %v3557_v57 = vsel %vm1377_vm9, %v3555_v55, %v3451_v30  ;;  %v3790_v30 = vld [vmem:[%s5415_s1] sm:$0xff]  ;;  %v5104_v3 = vpack.c.bf16 %v3895_v25, %v3894_v1 }
 0xc99   : > { %v5195_v59 = vpop.eup %5194  ;;  %4887 = vmatmul.mubr.msk.f32.vlgmr.msra.gmra.mrb[24].mxu0 %vm1188_vm3, %v3557_v57  ;;  %v5084_v32 = vpack.c.bf16 %v3791_v31, %v3790_v30  ;;  %v4405_v55 = vld [vmem:[%s5905_s25] ss:$0 sm:$0xff] }
 0xc9a   : > { %v3556_v60 = vmul.f32 %v5195_v59, %v5191_v50 }
 0xc9b   : > { %5085 = vmatprep.subr.bf16.mxu0 %v5084_v32 }
 0xc9c   : > { %v3558_v7 = vsel %vm1378_vm8, %v3556_v60, %v3527_v34  ;;  %5087 = vmatpush3.bf16.msra.mxu0 %v5084_v32  ;;  %v3793_v34 = vld [vmem:[%s5415_s1 + $0x18] sm:$0xff] }
 0xc9d   : > { %4892 = vmatmul.mubr.msk.f32.vlgmr.msra.gmra.mrb[28].mxu1 %vm1188_vm3, %v3558_v7  ;;  %v5088_v37 = vpack.c.bf16 %v3793_v34, %v3792_v33 }
 0xc9e   : > { %5095 = vmatpush3.bf16.msra.mxu1 %v5092_v48 }
 0xc9f   : > { %5089 = vmatprep.subr.bf16.mxu0 %v5088_v37  ;;  %5097 = vmatprep.subr.bf16.mxu1 %v5096_v44 }
 0xca0   : > { %5091 = vmatpush3.bf16.msra.mxu0 %v5088_v37 }
 0xca2   : > { %5099 = vmatpush3.bf16.msra.mxu1 %v5096_v44 }
 0xd6c   : > { %v3628_v9 = vpop.f32.mrb[24].mxu0 }
 0xd6d   : > { %3723 = vrot.lane.b32.xlu1 %v3628_v9, %s5265_s30  ;;  %v4888_v61 = vpop.f32.mrb[25].mxu0 }
 0xd70   : > { %v3701_v62 = vpop.f32.mrb[28].mxu1 }
 0xd71   : > { %3725 = vrot.lane.b32.xlu0 %v3701_v62, %s5265_s30  ;;  %v4893_v63 = vpop.f32.mrb[29].mxu1  ;;  %v3892_v62 = vld [vmem:[%s5421_s24 + $0x20] sm:$0xff] }
 0xd72   : > { %v3893_v63 = vld [vmem:[%s5421_s24 + $0x28] sm:$0xff] }
 0xd73   : > { %v5100_v0 = vpack.c.bf16 %v3893_v63, %v3892_v62 }
 0xd75   : > { %5101 = vmatprep.subr.bf16.mxu1 %v5100_v0 }
 0xd76   : > { %5103 = vmatpush3.bf16.msra.mxu1 %v5100_v0 }
 0xd77   : > { %5105 = vmatprep.subr.bf16.mxu1 %v5104_v3 }
 0xd7a   : > { %5107 = vmatpush3.bf16.msra.mxu1 %v5104_v3 }
 0xddf   : > { %v3724_v6 = vpop.permute.xlu1 %3723 }
 0xde0   : > { %v3735_v11 = vsel %vm3734_vm0, %v3732_v18, %v3724_v6 }
 0xde1   : > { %vm3737_vm4 = vcmp.gt.f32.partialorder %v3735_v11, 0.0  ;;  %v3739_v12 = vmul.f32 0.01, %v3735_v11 }
 0xde3   : > { %v3726_v14 = vpop.permute.xlu0 %3725  ;;  %v3741_v15 = vsel %vm3737_vm4, %v3735_v11, %v3739_v12 }
 0xde4   : > { %v3736_v16 = vsel %vm3734_vm0, %v3733_v13, %v3726_v14  ;;  %v3743_v2 = vadd.f32 %v5204_v17, %v3741_v15 }
 0xde5   : > { %vm3738_vm5 = vcmp.gt.f32.partialorder %v3736_v16, 0.0  ;;  %v3740_v19 = vmul.f32 0.01, %v3736_v16 }
 0xde6   : > { %v3747_v58 = vsel %vm784_vm1, %v3743_v2, 0.0 }
 0xde7   : > { %3748 = vadd.xlane.f32.xlu1 %v3747_v58  ;;  %v3742_v4 = vsel %vm3738_vm5, %v3736_v16, %v3740_v19  ;;  %v4409_v16 = vld [vmem:[%s739_s2] ss:$0 sm:$0xff] }
 0xde8   : > { %v3744_v21 = vadd.f32 %v5205_v20, %v3742_v4 }
 0xdea   : > { %v3750_v56 = vsel %vm784_vm1, %v3744_v21, 0.0 }
 0xdeb   : > { %3751 = vadd.xlane.f32.xlu0 %v3750_v56 }
 0xe74   : > { %v3749_v36 = vpop.xlane.xlu1 %3748 }
 0xe75   : > { %v3754_v22 = vmul.f32 0.03125, %v3749_v36 }
 0xe77   : > { %v3756_v23 = vsub.f32 %v3743_v2, %v3754_v22 }
 0xe78   : > { %v3752_v24 = vpop.xlane.xlu0 %3751 }
 0xe79   : > { %v3755_v27 = vmul.f32 0.03125, %v3752_v24  ;;  %v3758_v43 = vmul.f32 %v3756_v23, %v3756_v23 }
 0xe7b   : > { %v3757_v28 = vsub.f32 %v3744_v21, %v3755_v27  ;;  %v3760_v29 = vsel %vm784_vm1, %v3758_v43, 0.0 }
 0xe7c   : > { %3761 = vadd.xlane.f32.xlu0 %v3760_v29 }
 0xe7d   : > { %v3759_v10 = vmul.f32 %v3757_v28, %v3757_v28 }
 0xe7f   : > { %v3763_v26 = vsel %vm784_vm1, %v3759_v10, 0.0 }
 0xe80   : > { %3764 = vadd.xlane.f32.xlu1 %v3763_v26 }
 0xf09   : > { %v3762_v45 = vpop.xlane.xlu0 %3761 }
 0xf0a   : > { %v3766_v46 = vmul.f32 0.03125, %v3762_v45 }
 0xf0c   : > { %v3768_v47 = vadd.f32 1e-05, %v3766_v46 }
 0xf0d   : > { %v3765_v49 = vpop.xlane.xlu1 %3764 }
 0xf0e   : > { %5196 = vrsqrt.f32 %v3768_v47  ;;  %v3767_v50 = vmul.f32 0.03125, %v3765_v49 }
 0xf10   : > { %v3769_v51 = vadd.f32 1e-05, %v3767_v50 }
 0xf12   : > { %5198 = vrsqrt.f32 %v3769_v51 }
 0xf18   : > { %v5197_v52 = vpop.eup %5196 }
 0xf19   : > { %v3772_v54 = vmul.f32 %v5197_v52, %v3756_v23 }
 0xf1b   : > { %v3780_v57 = vmul.f32 %v4404_v53, %v3772_v54 }
 0xf1c   : > { %v5199_v59 = vpop.eup %5198 }
 0xf1d   : > { %v3773_v60 = vmul.f32 %v5199_v59, %v3757_v28  ;;  %v3788_v7 = vadd.f32 %v4405_v55, %v3780_v57 }
 0xf1f   : > { %v3781_v9 = vmul.f32 %v4404_v53, %v3773_v60  ;;  %4902 = vmatprep.mubr.msk.f32.mxu0 %vm784_vm1, %v3788_v7 }
 0xf21   : > { %v3789_v61 = vadd.f32 %v4405_v55, %v3781_v9 }
 0xf23   : > { %4903 = vmatmul.mubr.msk.f32.vlgmr.msra.gmra.mrb[26].mxu0 %vm784_vm1, %v3789_v61 }
 0xff6   : > { %v4904_v18 = vpop.f32.mrb[26].mxu0 }
 0xff7   : > { %v3879_v6 = vadd.f32 %v4904_v18, %v4406_v5  ;;  %v3873_v8 = vpop.f32.mrb[27].mxu0 }
 0xff8   : > { %v3874_v11 = vadd.f32 %v4406_v5, %v3873_v8 }
 0xff9   : > { %v3885_v12 = vmul.f32 0.01, %v3879_v6  ;;  %vm3883_vm3 = vcmp.gt.f32.partialorder %v3879_v6, 0.0 }
 0xffa   : > { %vm3882_vm6 = vcmp.gt.f32.partialorder %v3874_v11, 0.0  ;;  %v3884_v13 = vmul.f32 0.01, %v3874_v11 }
 0xffb   : > { %v3887_v15 = vsel %vm3883_vm3, %v3879_v6, %v3885_v12 }
 0xffc   : > { %v3886_v14 = vsel %vm3882_vm6, %v3874_v11, %v3884_v13 }
 0xffd   : > { %4921 = vmatprep.mubr.msk.f32.mxu1 %vm3903_vm7, %v3886_v14 }
 0xffe   : > { %4922 = vmatmul.mubr.msk.f32.vlgmr.msra.gmra.mrb[30].mxu1 %vm3903_vm7, %v3887_v15 }
0x10d1   : > { %v4923_v17 = vpop.f32.mrb[30].mxu1 }
0x10d2   : > { %v3982_v2 = vadd.f32 %v4923_v17, %v4409_v16  ;;  %v3976_v19 = vpop.f32.mrb[31].mxu1 }
0x10d3   : > { %v3977_v58 = vadd.f32 %v4409_v16, %v3976_v19 }
0x10d4   : > { %v3986_v4 = vadd.f32 %v3982_v2, %v3789_v61 }
0x10d5   : > { %v3985_v20 = vadd.f32 %v3977_v58, %v3788_v7 }
0x10d6   : > { %v3992_v21 = vsel %vm784_vm1, %v3986_v4, 0.0 }
0x10d7   : > { %3993 = vadd.xlane.f32.xlu1 %v3992_v21  ;;  %v3989_v56 = vsel %vm784_vm1, %v3985_v20, 0.0 }
0x10d8   : > { %3990 = vadd.xlane.f32.xlu0 %v3989_v56 }
0x1164   : > { %v3994_v36 = vpop.xlane.xlu1 %3993 }
0x1165   : > { %v3996_v22 = vmul.f32 0.03125, %v3994_v36  ;;  %v3991_v23 = vpop.xlane.xlu0 %3990 }
0x1166   : > { %v3995_v24 = vmul.f32 0.03125, %v3991_v23 }
0x1167   : > { %v3998_v27 = vsub.f32 %v3986_v4, %v3996_v22 }
0x1168   : > { %v3997_v43 = vsub.f32 %v3985_v20, %v3995_v24 }
0x1169   : > { %v4000_v28 = vmul.f32 %v3998_v27, %v3998_v27 }
0x116a   : > { %v3999_v29 = vmul.f32 %v3997_v43, %v3997_v43 }
0x116b   : > { %v4004_v10 = vsel %vm784_vm1, %v4000_v28, 0.0 }
0x116c   : > { %4005 = vadd.xlane.f32.xlu1 %v4004_v10  ;;  %v4001_v26 = vsel %vm784_vm1, %v3999_v29, 0.0 }
0x116d   : > { %4002 = vadd.xlane.f32.xlu0 %v4001_v26 }
0x11f9   : > { %v4006_v30 = vpop.xlane.xlu1 %4005 }
0x11fa   : > { %v4008_v31 = vmul.f32 0.03125, %v4006_v30  ;;  %v4003_v32 = vpop.xlane.xlu0 %4002 }
0x11fb   : > { %v4007_v33 = vmul.f32 0.03125, %v4003_v32 }
0x11fc   : > { %v4010_v34 = vadd.f32 1e-05, %v4008_v31 }
0x11fd   : > { %v4009_v37 = vadd.f32 1e-05, %v4007_v33 }
0x11fe   : > { %5200 = vrsqrt.f32 %v4010_v34 }
0x11ff   : > { %5202 = vrsqrt.f32 %v4009_v37 }
0x1208   : > { %v5201_v38 = vpop.eup %5200 }
0x1209   : > { %v5203_v40 = vpop.eup %5202  ;;  %v4014_v48 = vmul.f32 %v5201_v38, %v3998_v27 }
0x120a   : > { %v4013_v44 = vmul.f32 %v5203_v40, %v3997_v43 }
0x120b   : > { %v4022_v45 = vmul.f32 %v4412_v39, %v4014_v48 }
0x120c   : > { %v4021_v46 = vmul.f32 %v4412_v39, %v4013_v44  ;;  %4038 = sbr.rel (%p4414_p6) target bundleno = 4627 (0x1213), region = 88 }
0x120d   : > { %v4030_v47 = vadd.f32 %v4413_v41, %v4022_v45 }
0x120e   : > { %v4029_v49 = vadd.f32 %v4413_v41, %v4021_v46 }
0x120f   : > { %v4032_v50 = vmul.f32 %v4030_v47, %v5495_v42 }
0x1210   : > { %v4031_v51 = vmul.f32 %v4029_v49, %v5481_v35 }
0x1211   : > { %4034 = vst.msk [vmem:[#allocation2 + $0x8] sm:$0xff] %vm784_vm1, %v4032_v50  ;;  %4040 = vst.msk [vmem:[#allocation3 + $0x8] sm:$0xff] (!%p4414_p6), %vm784_vm1, %v4032_v50 }
0x1212   : > { %4033 = vst.msk [vmem:[#allocation2] sm:$0xff] %vm784_vm1, %v4031_v51  ;;  %4039 = vst.msk [vmem:[#allocation3] sm:$0xff] (!%p4414_p6), %vm784_vm1, %v4031_v51 }
0x1213 PF: > { %s5907_s23 = sld [smem:[#allocation7_spill]]  ;;  %s5266_s28 = smov [#allocation3]  }
0x1214   : > { %s4050_s1 = sshll.u32 %s5266_s28, 4  ;;  %s4051_s1 = int_to_ptr.vmem [resolvable:$true] %s4050_s1 }
0x1215   : > { %s5206_s7 = scalar_lea.vmem %s4051_s1, 256  ;;  %p5213_p11 = scmp.lt.s32.totalorder %s4051_s1, %s4051_s1 }
0x1216   : > { %p5207_p8 = scmp.ne.s32.totalorder %s4051_s1, %s5206_s7  ;;  %p5214_p12 = scmp.lt.s32.totalorder %s5206_s7, %s5206_s7 }
0x1218   : > { %p5215_p13 = por %p5214_p12, %p5213_p11 }
0x1219   : > { %s5908_s3 = sadd.s32 4294967295, %s5907_s23  }
0x121a   : > { %p5828_p7 = scmp.eq.s32.totalorder %s5908_s3, 1 }
0x121c   : > { %p5208_p9 = pnand %p5207_p8, %p5828_p7 }
0x121e   : > { %p5209_p10 = pneg %p5208_p9 }
0x1220   : > { %p5216_p0 = pnand %p5215_p13, %p5209_p10 }
0x1222   : > { %5219 = shalt.err (!%p5216_p0)
}
0x1223   : > { %s5910_s22 = sld [smem:[#allocation16_spill]] }
0x1229   : > { %s5220_s5 = scalar_lea.hbm %s5910_s22, 256 }
0x122a   : > { %p5221_p1 = scmp.ne.s32.totalorder %s5910_s22, %s5220_s5  ;;  %p5226_p4 = scmp.lt.u32.totalorder %s5220_s5, %s5910_s22 }
0x122c   : > { %p5222_p2 = pnand %p5221_p1, %p5828_p7 }
0x122e   : > { %p5223_p3 = pneg %p5222_p2 }
0x1230   : > { %p5228_p5 = pnand %p5226_p4, %p5223_p3 }
0x1232   : > { %5231 = shalt.err (!%p5228_p5)
}
0x1233   : > { %s5267_s24 = smov 128  }
0x1234   : > { %5125 = dma.vmem_to_hbm [thread:$0]  (%p5828_p7), %s4051_s1, 256, %s5910_s22, [#allocation4], %s5267_s24, %s5267_s24, %s5263_s15  }
0x1235   : > { %5245 = dma.done.wait (%p5828_p7), [#allocation4], 256  }
0x1236   : > { %5247 = vsyncadd (%p5828_p7), [#allocation4], 4294967040 }
0x1237 PF: > { %s5911_s29 = sld [smem:[#allocation7_spill]]  ;;  %s5912_s18 = sld [smem:[#allocation6_spill]] }
0x1238   : > { %s5913_s19 = sld [smem:[#allocation8_spill]] }
0x123d   : > { %s26_s20 = sadd.s32 1, %s5911_s29  }
0x123e   : > { %p23_p6 = scmp.ge.s32.totalorder %s26_s20, 4  }
0x1240   :  { %25 = sbr.rel (!%p23_p6) target bundleno = 10 (0xa), region = 173 }
0x1247   :  { %4066 = vsyncpa [#allocation4], 1 }
0x1248   :  { %4068 = vsyncpa [#allocation4 + $0x1], 1 }

</bundles_post_ra>
